<compile_context>
chip_gen: v5e
topology: v5e:2x2
jax: 0.10.0
libtpu: 0.0.40
codegen_flags: <defaults>
</compile_context>

<pallas_src>
import functools

import jax
import jax.numpy as jnp
from jax.experimental import pallas as pl
from jax.experimental.pallas import tpu as pltpu


# ---------------------------------------------------------------------------
# Kernel
# ---------------------------------------------------------------------------
def _gnn_kernel(x_ref, adj_ref,
                w1a_ref, w1b_ref, b1_ref,
                w2a_ref, w2b_ref, b2_ref,
                w3a_ref, w3b_ref, b3_ref,
                wl1_ref, wl2_ref, wl3_ref, bl_ref,
                out_ref, *, project_first):
    f32 = jnp.float32
    bf16 = jnp.bfloat16

    adj = adj_ref[...]          # (M, M) bf16 block-diagonal adjacency for this group
    h0 = x_ref[...]             # (M, Cin) bf16, group rows flattened

    def conv(h, wa_ref, wb_ref, b_ref, proj_first):
        b = b_ref[...]                               # (1, Cout) f32
        cout = b.shape[-1]
        if proj_first:
            # wa = [W_rel | W_root]: one fused MXU pass; both halves stay in one lane
            # tile (2*Cout <= 128 here). Cheaper when C_in > C_out (associativity:
            # project before aggregating).
            both = jnp.dot(h, wa_ref[...], preferred_element_type=f32)   # (M, 2*Cout)
            rel = both[:, :cout].astype(bf16)
            out = jnp.dot(adj, rel, preferred_element_type=f32) + both[:, cout:]
        else:
            # aggregate first (cheaper when C_in <= C_out): (adj@h) @ W_rel + h @ W_root
            aggd = jnp.dot(adj, h, preferred_element_type=f32).astype(bf16)
            out = (jnp.dot(aggd, wa_ref[...], preferred_element_type=f32)
                   + jnp.dot(h, wb_ref[...], preferred_element_type=f32))
        # bias + relu in f32, cast to bf16 for the next MXU stage
        return jnp.maximum(out + b, 0.0).astype(bf16)

    x1 = conv(h0, w1a_ref, w1b_ref, b1_ref, project_first[0])
    x2 = conv(x1, w2a_ref, w2b_ref, b2_ref, project_first[1])
    x3 = conv(x2, w3a_ref, w3b_ref, b3_ref, project_first[2])

    # concat([x1,x2,x3], -1) @ W_lin + b_lin expressed as three accumulating MXU pushes
    # into one f32 accumulator (split weights prepared once in prepare_params). The
    # output columns are zero-padded to O_pad >= 128 so the HBM store is lane-dense.
    out = jnp.dot(x1, wl1_ref[...], preferred_element_type=f32)
    out = out + jnp.dot(x2, wl2_ref[...], preferred_element_type=f32)
    out = out + jnp.dot(x3, wl3_ref[...], preferred_element_type=f32)
    out = out + bl_ref[...]
    out_ref[...] = jnp.maximum(out, 0.0)


# ---------------------------------------------------------------------------
# Wrapper helpers
# ---------------------------------------------------------------------------
def _tensorcores_per_chip():
    """Splitting the grid only pays on chips with >1 TensorCore (v7x); on v5e/v6e the
    grid is a serial loop and extra steps are pure per-step overhead."""
    try:
        info = pltpu.get_tpu_info()
        for name in ("num_tensorcores", "tensorcores_per_chip", "num_cores",
                     "cores_per_chip"):
            v = getattr(info, name, None)
            if v:
                return int(v)
    except Exception:
        pass
    try:
        return int(getattr(jax.devices()[0], "num_cores", 1) or 1)
    except Exception:
        return 1


def _choose_group(batch, num_nodes, *, target_rows=512, min_steps=1):
    """Largest divisor G of `batch` with G*num_nodes <= target_rows (big per-step M
    amortises per-grid-step overhead and fills the MXU M dimension), then optionally
    reduced so the grid keeps >= min_steps steps (v7x dual TensorCore)."""
    divisors = [d for d in range(1, batch + 1) if batch % d == 0]
    g_max = max(1, target_rows // max(1, num_nodes))
    cand = [d for d in divisors if d <= g_max] or [1]
    g = max(cand)
    if min_steps > 1:
        cand = [d for d in divisors if d <= g and batch // d >= min_steps]
        if cand:
            g = max(cand)
    # With more than one grid step the per-step row count must be sublane (8) aligned
    # for the BlockSpec (8,128) rule; otherwise collapse to a single step.
    if batch // g > 1 and (g * num_nodes) % 8 != 0:
        aligned = [d for d in divisors if (d * num_nodes) % 8 == 0 and d <= g_max]
        g = max(aligned) if aligned else batch
    return g


def prepare_params(params):
    """One-time parameter prep, hoisted out of the per-call path:
      * decide project-first vs aggregate-first per conv layer; for project-first layers
        fuse [W_rel | W_root] into a single MXU operand,
      * split w_lin into per-branch blocks (concat expressed as accumulation),
      * zero-pad the final linear to O_pad (>=128) lanes for a lane-dense output store,
      * cast all MXU operands to bfloat16 (biases stay f32 for the f32 accumulator)."""
    bf16 = jnp.bfloat16
    f32 = jnp.float32
    H = params["w1_rel"].shape[1]
    O = params["w3_rel"].shape[1]
    O_pad = max(128, ((O + 127) // 128) * 128)

    def conv_weights(wr, ws):
        cin, cout = wr.shape
        proj_first = cin > cout
        if proj_first:
            wa = jnp.concatenate([wr, ws], axis=1).astype(bf16)   # (Cin, 2*Cout)
            wb = ws.astype(bf16)                                  # unused in this branch
        else:
            wa = wr.astype(bf16)
            wb = ws.astype(bf16)
        return wa, wb, proj_first

    w1a, w1b, p1 = conv_weights(params["w1_rel"], params["w1_root"])
    w2a, w2b, p2 = conv_weights(params["w2_rel"], params["w2_root"])
    w3a, w3b, p3 = conv_weights(params["w3_rel"], params["w3_root"])

    wl = params["w_lin"]

    def pad_cols(w):
        return jnp.pad(w, ((0, 0), (0, O_pad - O))).astype(bf16)

    return dict(
        project_first=(p1, p2, p3), H=H, O=O, O_pad=O_pad,
        w1a=w1a, w1b=w1b, b1=params["b1"].astype(f32),
        w2a=w2a, w2b=w2b, b2=params["b2"].astype(f32),
        w3a=w3a, w3b=w3b, b3=params["b3"].astype(f32),
        wl1=pad_cols(wl[:H]), wl2=pad_cols(wl[H:2 * H]), wl3=pad_cols(wl[2 * H:]),
        bl=jnp.pad(params["b_lin"], ((0, 0), (0, O_pad - O))).astype(f32),
    )


def gnn_forward(x, adj, prep, group=None):
    """x: (B, N, Cin) f32, adj: (B, N, N) f32, prep: output of prepare_params."""
    B, N, Cin = x.shape
    H, O, O_pad = prep["H"], prep["O"], prep["O_pad"]

    if group is None:
        min_steps = 2 if (_tensorcores_per_chip() >= 2 and B >= 2) else 1
        group = _choose_group(B, N, target_rows=512, min_steps=min_steps)
    G = group
    assert B % G == 0, "batch must be divisible by the group size"
    steps = B // G
    M = G * N

    # Row-flatten x and build the per-group block-diagonal adjacency so the neighbour
    # aggregation becomes ONE (M,M)@(M,C) matmul per layer per step instead of G tiny
    # per-graph matmuls. bf16 is exact for the 0/1 adjacency and halves its footprint.
    # TODO(synk): for large num_nodes, tile the node dimension instead of densely
    # block-diagonalising (block-diag costs G x the adjacency bytes).
    x_flat = x.reshape(B * N, Cin).astype(jnp.bfloat16)
    adj_g = adj.astype(jnp.bfloat16).reshape(steps, G, N, N)
    eye = jnp.eye(G, dtype=jnp.bfloat16)
    adj_bd = adj_g[:, :, None, :, :] * eye[None, :, :, None, None]   # (steps,G,G,N,N)
    adj_bd = adj_bd.transpose(0, 1, 3, 2, 4).reshape(B * N, M)       # (steps*M, M)

    weights = [prep["w1a"], prep["w1b"], prep["b1"],
               prep["w2a"], prep["w2b"], prep["b2"],
               prep["w3a"], prep["w3b"], prep["b3"],
               prep["wl1"], prep["wl2"], prep["wl3"], prep["bl"]]

    def const_spec(arr):
        idx = (0,) * arr.ndim
        return pl.BlockSpec(tuple(arr.shape), lambda s, _i=idx: _i)

    in_specs = ([pl.BlockSpec((M, Cin), lambda s: (s, 0)),
                 pl.BlockSpec((M, M), lambda s: (s, 0))]
                + [const_spec(w) for w in weights])

    kernel = functools.partial(_gnn_kernel, project_first=prep["project_first"])

    # VMEM budget (double-buffered x/adj/out blocks + resident weights) with headroom,
    # and an advisory cost estimate for XLA scheduling.
    io_bytes = 2 * (M * Cin * 2 + M * M * 2 + M * O_pad * 4)
    w_bytes = 2 * sum(int(w.size) * w.dtype.itemsize for w in weights)
    vmem_limit = int(min(max(4 * (io_bytes + w_bytes), 32 << 20), 64 << 20))

    flops = 2 * B * N * (M * (Cin + H + O)                       # block-diag aggregation
                         + 2 * Cin * H + 2 * H * H + 2 * H * O   # conv weight matmuls
                         + (2 * H + O) * O_pad)                  # split final linear
    bytes_accessed = int(x_flat.size * 2 + adj_bd.size * 2 + B * N * O_pad * 4
                         + sum(int(w.size) * w.dtype.itemsize for w in weights))
    cost = pl.CostEstimate(flops=int(flops), transcendentals=0,
                           bytes_accessed=bytes_accessed)

    out_flat = pl.pallas_call(
        kernel,
        out_shape=jax.ShapeDtypeStruct((B * N, O_pad), jnp.float32),
        grid_spec=pltpu.PrefetchScalarGridSpec(
            num_scalar_prefetch=0,
            grid=(steps,),
            in_specs=in_specs,
            out_specs=pl.BlockSpec((M, O_pad), lambda s: (s, 0)),
        ),
        compiler_params=pltpu.CompilerParams(
            dimension_semantics=("parallel",),
            vmem_limit_bytes=vmem_limit),
        cost_estimate=cost,
    )(x_flat, adj_bd, *weights)

    # Drop the lane padding and restore the (B, N, O) layout.
    return out_flat[:, :O].reshape(B, N, O)


# ---------------------------------------------------------------------------
# Parameters and references
# ---------------------------------------------------------------------------
def init_params(key, in_channels, hidden_channels, out_channels):
    """Deterministic synthetic parameters. Weights stored as (C_in, C_out)."""
    keys = jax.random.split(key, 11)

    def w(k, cin, cout):
        return jax.random.normal(k, (cin, cout), jnp.float32) * (1.0 / jnp.sqrt(cin))

    cat_dim = 2 * hidden_channels + out_channels
    return {
        "w1_rel":  w(keys[0], in_channels, hidden_channels),
        "w1_root": w(keys[1], in_channels, hidden_channels),
        "b1":      jax.random.normal(keys[2], (1, hidden_channels), jnp.float32) * 0.1,
        "w2_rel":  w(keys[3], hidden_channels, hidden_channels),
        "w2_root": w(keys[4], hidden_channels, hidden_channels),
        "b2":      jax.random.normal(keys[5], (1, hidden_channels), jnp.float32) * 0.1,
        "w3_rel":  w(keys[6], hidden_channels, out_channels),
        "w3_root": w(keys[7], hidden_channels, out_channels),
        "b3":      jax.random.normal(keys[8], (1, out_channels), jnp.float32) * 0.1,
        "w_lin":   w(keys[9], cat_dim, out_channels),
        "b_lin":   jax.random.normal(keys[10], (1, out_channels), jnp.float32) * 0.1,
    }


def gnn_reference(x, adj, p):
    """Pure f32 reference (exact module semantics)."""
    def conv(h, wr, ws, b):
        return jax.nn.relu(jnp.einsum("bij,bjc->bic", adj, h) @ wr + h @ ws + b)
    x1 = conv(x,  p["w1_rel"], p["w1_root"], p["b1"])
    x2 = conv(x1, p["w2_rel"], p["w2_root"], p["b2"])
    x3 = conv(x2, p["w3_rel"], p["w3_root"], p["b3"])
    cat = jnp.concatenate([x1, x2, x3], axis=-1)
    return jax.nn.relu(cat @ p["w_lin"] + p["b_lin"])


def gnn_reference_mixed(x, adj, p):
    """Pure-JAX reference mirroring the kernel's numerics (bf16 MXU operands, f32
    accumulation, project-first association) for a tight correctness check."""
    bf, f32 = jnp.bfloat16, jnp.float32
    adj_b = adj.astype(bf)
    h = x.astype(bf)
    H = p["w1_rel"].shape[1]

    def agg(hb):
        return jnp.einsum("bij,bjc->bic", adj_b, hb, preferred_element_type=f32)

    def mm(a, b):
        return jnp.einsum("bnc,cd->bnd", a, b, preferred_element_type=f32)

    def conv(hb, wr, ws, b):
        proj_first = wr.shape[0] > wr.shape[1]
        wr, ws = wr.astype(bf), ws.astype(bf)
        if proj_first:
            rel = mm(hb, wr).astype(bf)
            out = agg(rel) + mm(hb, ws)
        else:
            aggd = agg(hb).astype(bf)
            out = mm(aggd, wr) + mm(hb, ws)
        return jnp.maximum(out + b, 0.0).astype(bf)

    x1 = conv(h,  p["w1_rel"], p["w1_root"], p["b1"])
    x2 = conv(x1, p["w2_rel"], p["w2_root"], p["b2"])
    x3 = conv(x2, p["w3_rel"], p["w3_root"], p["b3"])
    wl = p["w_lin"].astype(bf)
    out = (mm(x1, wl[:H]) + mm(x2, wl[H:2 * H]) + mm(x3, wl[2 * H:]) + p["b_lin"])
    return jnp.maximum(out, 0.0)


# ---------------------------------------------------------------------------
if __name__ == "__main__":
    B, N = 8, 16
    in_channels, hidden_channels, out_channels = 8, 32, 16

    key = jax.random.PRNGKey(0)
    kx, kadj, kp = jax.random.split(key, 3)

    x = jax.random.normal(kx, (B, N, in_channels), jnp.float32)
    # symmetric 0/1 adjacency (DenseGraphConv does not require self loops)
    a = (jax.random.uniform(kadj, (B, N, N)) > 0.5).astype(jnp.float32)
    adj = jnp.maximum(a, jnp.swapaxes(a, -1, -2))

    params = init_params(kp, in_channels, hidden_channels, out_channels)
    prep = prepare_params(params)    # one-time: split/fuse/pad/cast (off the hot path)

    out = gnn_forward(x, adj, prep)
    out = jax.block_until_ready(out)
    assert out.shape == (B, N, out_channels)

    # Tight check vs a reference mirroring the kernel's mixed precision & association.
    ref_mixed = gnn_reference_mixed(x, adj, params)
    scale = float(jnp.max(jnp.abs(ref_mixed))) + 1e-6
    err_mixed = float(jnp.max(jnp.abs(out - ref_mixed))) / scale
    assert err_mixed < 1e-2, f"mismatch vs mixed-precision reference: {err_mixed}"

    # Loose check vs the full-f32 module reference (difference is bf16 rounding only).
    ref = gnn_reference(x, adj, params)
    scale = float(jnp.max(jnp.abs(ref))) + 1e-6
    err = float(jnp.max(jnp.abs(out - ref))) / scale
    assert err < 1e-1, f"mismatch vs f32 reference: {err}"

    print("KERNEL_OK")
</pallas_src>

<mosaic_0001>
module attributes {stable_mosaic.version = 11 : i64} {
  func.func @_gnn_kernel(%arg0: i32, %arg1: memref<128x8xbf16, #tpu.memory_space<vmem>>, %arg2: memref<128x128xbf16, #tpu.memory_space<vmem>>, %arg3: memref<8x32xbf16, #tpu.memory_space<vmem>>, %arg4: memref<8x32xbf16, #tpu.memory_space<vmem>>, %arg5: memref<1x32xf32, #tpu.memory_space<vmem>>, %arg6: memref<32x32xbf16, #tpu.memory_space<vmem>>, %arg7: memref<32x32xbf16, #tpu.memory_space<vmem>>, %arg8: memref<1x32xf32, #tpu.memory_space<vmem>>, %arg9: memref<32x32xbf16, #tpu.memory_space<vmem>>, %arg10: memref<32x16xbf16, #tpu.memory_space<vmem>>, %arg11: memref<1x16xf32, #tpu.memory_space<vmem>>, %arg12: memref<32x128xbf16, #tpu.memory_space<vmem>>, %arg13: memref<32x128xbf16, #tpu.memory_space<vmem>>, %arg14: memref<16x128xbf16, #tpu.memory_space<vmem>>, %arg15: memref<1x128xf32, #tpu.memory_space<vmem>>, %arg16: memref<128x128xf32, #tpu.memory_space<vmem>>) attributes {dimension_semantics = [#tpu.dimension_semantics<parallel>], iteration_bounds = array<i64: 1>, scalar_prefetch = 0 : i64, scratch_operands = 0 : i64, tpu.core_type = #tpu.core_type<tc>, window_params = [{transform_indices = @transform_0, window_bounds = array<i64: 128, 8>}, {transform_indices = @transform_1, window_bounds = array<i64: 128, 128>}, {pipeline_mode = #tpu.pipeline_mode<synchronous>, transform_indices = @transform_2, window_bounds = array<i64: 8, 32>}, {pipeline_mode = #tpu.pipeline_mode<synchronous>, transform_indices = @transform_3, window_bounds = array<i64: 8, 32>}, {pipeline_mode = #tpu.pipeline_mode<synchronous>, transform_indices = @transform_4, window_bounds = array<i64: 1, 32>}, {pipeline_mode = #tpu.pipeline_mode<synchronous>, transform_indices = @transform_5, window_bounds = array<i64: 32, 32>}, {pipeline_mode = #tpu.pipeline_mode<synchronous>, transform_indices = @transform_6, window_bounds = array<i64: 32, 32>}, {pipeline_mode = #tpu.pipeline_mode<synchronous>, transform_indices = @transform_7, window_bounds = array<i64: 1, 32>}, {pipeline_mode = #tpu.pipeline_mode<synchronous>, transform_indices = @transform_8, window_bounds = array<i64: 32, 32>}, {pipeline_mode = #tpu.pipeline_mode<synchronous>, transform_indices = @transform_9, window_bounds = array<i64: 32, 16>}, {pipeline_mode = #tpu.pipeline_mode<synchronous>, transform_indices = @transform_10, window_bounds = array<i64: 1, 16>}, {pipeline_mode = #tpu.pipeline_mode<synchronous>, transform_indices = @transform_11, window_bounds = array<i64: 32, 128>}, {pipeline_mode = #tpu.pipeline_mode<synchronous>, transform_indices = @transform_12, window_bounds = array<i64: 32, 128>}, {pipeline_mode = #tpu.pipeline_mode<synchronous>, transform_indices = @transform_13, window_bounds = array<i64: 16, 128>}, {pipeline_mode = #tpu.pipeline_mode<synchronous>, transform_indices = @transform_14, window_bounds = array<i64: 1, 128>}, {transform_indices = @transform_15, window_bounds = array<i64: 128, 128>}]} {
    %c0 = arith.constant 0 : index
    %c0_0 = arith.constant 0 : index
    %0 = vector.load %arg2[%c0, %c0_0] : memref<128x128xbf16, #tpu.memory_space<vmem>>, vector<128x128xbf16>
    %c0_1 = arith.constant 0 : index
    %c0_2 = arith.constant 0 : index
    %1 = vector.load %arg1[%c0_1, %c0_2] : memref<128x8xbf16, #tpu.memory_space<vmem>>, vector<128x8xbf16>
    %c0_3 = arith.constant 0 : index
    %c0_4 = arith.constant 0 : index
    %2 = vector.load %arg5[%c0_3, %c0_4] : memref<1x32xf32, #tpu.memory_space<vmem>>, vector<1x32xf32>
    %cst = arith.constant dense<0.000000e+00> : vector<128x8xf32>
    %3 = tpu.matmul %0, %1, %cst {dimension_numbers = #tpu.dot_dimension_numbers<[1], [0], [0], [1], [0, 0, 1, 1], [], []>} : vector<128x128xbf16>, vector<128x8xbf16>, vector<128x8xf32> -> vector<128x8xf32>
    %4 = arith.truncf %3 : vector<128x8xf32> to vector<128x8xbf16>
    %c0_5 = arith.constant 0 : index
    %c0_6 = arith.constant 0 : index
    %5 = vector.load %arg3[%c0_5, %c0_6] : memref<8x32xbf16, #tpu.memory_space<vmem>>, vector<8x32xbf16>
    %cst_7 = arith.constant dense<0.000000e+00> : vector<128x32xf32>
    %6 = tpu.matmul %4, %5, %cst_7 {dimension_numbers = #tpu.dot_dimension_numbers<[1], [0], [0], [1], [0, 0, 1, 1], [], []>} : vector<128x8xbf16>, vector<8x32xbf16>, vector<128x32xf32> -> vector<128x32xf32>
    %c0_8 = arith.constant 0 : index
    %c0_9 = arith.constant 0 : index
    %7 = vector.load %arg4[%c0_8, %c0_9] : memref<8x32xbf16, #tpu.memory_space<vmem>>, vector<8x32xbf16>
    %cst_10 = arith.constant dense<0.000000e+00> : vector<128x32xf32>
    %8 = tpu.matmul %1, %7, %cst_10 {dimension_numbers = #tpu.dot_dimension_numbers<[1], [0], [0], [1], [0, 0, 1, 1], [], []>} : vector<128x8xbf16>, vector<8x32xbf16>, vector<128x32xf32> -> vector<128x32xf32>
    %9 = arith.addf %6, %8 : vector<128x32xf32>
    %10 = vector.broadcast %2 : vector<1x32xf32> to vector<128x32xf32>
    %11 = arith.addf %9, %10 : vector<128x32xf32>
    %cst_11 = arith.constant 0.000000e+00 : f32
    %12 = vector.broadcast %cst_11 : f32 to vector<128x32xf32>
    %13 = arith.maximumf %11, %12 : vector<128x32xf32>
    %14 = arith.truncf %13 : vector<128x32xf32> to vector<128x32xbf16>
    %c0_12 = arith.constant 0 : index
    %c0_13 = arith.constant 0 : index
    %15 = vector.load %arg8[%c0_12, %c0_13] : memref<1x32xf32, #tpu.memory_space<vmem>>, vector<1x32xf32>
    %cst_14 = arith.constant dense<0.000000e+00> : vector<128x32xf32>
    %16 = tpu.matmul %0, %14, %cst_14 {dimension_numbers = #tpu.dot_dimension_numbers<[1], [0], [0], [1], [0, 0, 1, 1], [], []>} : vector<128x128xbf16>, vector<128x32xbf16>, vector<128x32xf32> -> vector<128x32xf32>
    %17 = arith.truncf %16 : vector<128x32xf32> to vector<128x32xbf16>
    %c0_15 = arith.constant 0 : index
    %c0_16 = arith.constant 0 : index
    %18 = vector.load %arg6[%c0_15, %c0_16] : memref<32x32xbf16, #tpu.memory_space<vmem>>, vector<32x32xbf16>
    %cst_17 = arith.constant dense<0.000000e+00> : vector<128x32xf32>
    %19 = tpu.matmul %17, %18, %cst_17 {dimension_numbers = #tpu.dot_dimension_numbers<[1], [0], [0], [1], [0, 0, 1, 1], [], []>} : vector<128x32xbf16>, vector<32x32xbf16>, vector<128x32xf32> -> vector<128x32xf32>
    %c0_18 = arith.constant 0 : index
    %c0_19 = arith.constant 0 : index
    %20 = vector.load %arg7[%c0_18, %c0_19] : memref<32x32xbf16, #tpu.memory_space<vmem>>, vector<32x32xbf16>
    %cst_20 = arith.constant dense<0.000000e+00> : vector<128x32xf32>
    %21 = tpu.matmul %14, %20, %cst_20 {dimension_numbers = #tpu.dot_dimension_numbers<[1], [0], [0], [1], [0, 0, 1, 1], [], []>} : vector<128x32xbf16>, vector<32x32xbf16>, vector<128x32xf32> -> vector<128x32xf32>
    %22 = arith.addf %19, %21 : vector<128x32xf32>
    %23 = vector.broadcast %15 : vector<1x32xf32> to vector<128x32xf32>
    %24 = arith.addf %22, %23 : vector<128x32xf32>
    %cst_21 = arith.constant 0.000000e+00 : f32
    %25 = vector.broadcast %cst_21 : f32 to vector<128x32xf32>
    %26 = arith.maximumf %24, %25 : vector<128x32xf32>
    %27 = arith.truncf %26 : vector<128x32xf32> to vector<128x32xbf16>
    %c0_22 = arith.constant 0 : index
    %c0_23 = arith.constant 0 : index
    %28 = vector.load %arg11[%c0_22, %c0_23] : memref<1x16xf32, #tpu.memory_space<vmem>>, vector<1x16xf32>
    %c0_24 = arith.constant 0 : index
    %c0_25 = arith.constant 0 : index
    %29 = vector.load %arg9[%c0_24, %c0_25] : memref<32x32xbf16, #tpu.memory_space<vmem>>, vector<32x32xbf16>
    %cst_26 = arith.constant dense<0.000000e+00> : vector<128x32xf32>
    %30 = tpu.matmul %27, %29, %cst_26 {dimension_numbers = #tpu.dot_dimension_numbers<[1], [0], [0], [1], [0, 0, 1, 1], [], []>} : vector<128x32xbf16>, vector<32x32xbf16>, vector<128x32xf32> -> vector<128x32xf32>
    %31 = vector.extract_strided_slice %30 {offsets = [0, 0], sizes = [128, 16], strides = [1, 1]} : vector<128x32xf32> to vector<128x16xf32>
    %32 = arith.truncf %31 : vector<128x16xf32> to vector<128x16xbf16>
    %cst_27 = arith.constant dense<0.000000e+00> : vector<128x16xf32>
    %33 = tpu.matmul %0, %32, %cst_27 {dimension_numbers = #tpu.dot_dimension_numbers<[1], [0], [0], [1], [0, 0, 1, 1], [], []>} : vector<128x128xbf16>, vector<128x16xbf16>, vector<128x16xf32> -> vector<128x16xf32>
    %34 = vector.extract_strided_slice %30 {offsets = [0, 16], sizes = [128, 16], strides = [1, 1]} : vector<128x32xf32> to vector<128x16xf32>
    %35 = arith.addf %33, %34 : vector<128x16xf32>
    %36 = vector.broadcast %28 : vector<1x16xf32> to vector<128x16xf32>
    %37 = arith.addf %35, %36 : vector<128x16xf32>
    %cst_28 = arith.constant 0.000000e+00 : f32
    %38 = vector.broadcast %cst_28 : f32 to vector<128x16xf32>
    %39 = arith.maximumf %37, %38 : vector<128x16xf32>
    %40 = arith.truncf %39 : vector<128x16xf32> to vector<128x16xbf16>
    %c0_29 = arith.constant 0 : index
    %c0_30 = arith.constant 0 : index
    %41 = vector.load %arg12[%c0_29, %c0_30] : memref<32x128xbf16, #tpu.memory_space<vmem>>, vector<32x128xbf16>
    %cst_31 = arith.constant dense<0.000000e+00> : vector<128x128xf32>
    %42 = tpu.matmul %14, %41, %cst_31 {dimension_numbers = #tpu.dot_dimension_numbers<[1], [0], [0], [1], [0, 0, 1, 1], [], []>} : vector<128x32xbf16>, vector<32x128xbf16>, vector<128x128xf32> -> vector<128x128xf32>
    %c0_32 = arith.constant 0 : index
    %c0_33 = arith.constant 0 : index
    %43 = vector.load %arg13[%c0_32, %c0_33] : memref<32x128xbf16, #tpu.memory_space<vmem>>, vector<32x128xbf16>
    %cst_34 = arith.constant dense<0.000000e+00> : vector<128x128xf32>
    %44 = tpu.matmul %27, %43, %cst_34 {dimension_numbers = #tpu.dot_dimension_numbers<[1], [0], [0], [1], [0, 0, 1, 1], [], []>} : vector<128x32xbf16>, vector<32x128xbf16>, vector<128x128xf32> -> vector<128x128xf32>
    %45 = arith.addf %42, %44 : vector<128x128xf32>
    %c0_35 = arith.constant 0 : index
    %c0_36 = arith.constant 0 : index
    %46 = vector.load %arg14[%c0_35, %c0_36] : memref<16x128xbf16, #tpu.memory_space<vmem>>, vector<16x128xbf16>
    %cst_37 = arith.constant dense<0.000000e+00> : vector<128x128xf32>
    %47 = tpu.matmul %40, %46, %cst_37 {dimension_numbers = #tpu.dot_dimension_numbers<[1], [0], [0], [1], [0, 0, 1, 1], [], []>} : vector<128x16xbf16>, vector<16x128xbf16>, vector<128x128xf32> -> vector<128x128xf32>
    %48 = arith.addf %45, %47 : vector<128x128xf32>
    %c0_38 = arith.constant 0 : index
    %c0_39 = arith.constant 0 : index
    %49 = vector.load %arg15[%c0_38, %c0_39] : memref<1x128xf32, #tpu.memory_space<vmem>>, vector<1x128xf32>
    %50 = vector.broadcast %49 : vector<1x128xf32> to vector<128x128xf32>
    %51 = arith.addf %48, %50 : vector<128x128xf32>
    %cst_40 = arith.constant 0.000000e+00 : f32
    %52 = vector.broadcast %cst_40 : f32 to vector<128x128xf32>
    %53 = arith.maximumf %51, %52 : vector<128x128xf32>
    %c0_41 = arith.constant 0 : index
    %c0_42 = arith.constant 0 : index
    %54 = vector.load %arg16[%c0_41, %c0_42] : memref<128x128xf32, #tpu.memory_space<vmem>>, vector<128x128xf32>
    tpu.vector_store %arg16[%c0_41, %c0_42], %53 {strides = array<i32>} : memref<128x128xf32, #tpu.memory_space<vmem>>, vector<128x128xf32>,
    return
  }
  func.func @transform_0(%arg0: i32) -> (i32, i32) {
    %c0_i32 = arith.constant 0 : i32
    %c0_i32_0 = arith.constant 0 : i32
    return %arg0, %c0_i32 : i32, i32
  }
  func.func @transform_1(%arg0: i32) -> (i32, i32) {
    %c0_i32 = arith.constant 0 : i32
    %c0_i32_0 = arith.constant 0 : i32
    return %arg0, %c0_i32 : i32, i32
  }
  func.func @transform_2(%arg0: i32) -> (i32, i32) {
    %c0_i32 = arith.constant 0 : i32
    %c0_i32_0 = arith.constant 0 : i32
    %c0_i32_1 = arith.constant 0 : i32
    return %c0_i32, %c0_i32_0 : i32, i32
  }
  func.func @transform_3(%arg0: i32) -> (i32, i32) {
    %c0_i32 = arith.constant 0 : i32
    %c0_i32_0 = arith.constant 0 : i32
    %c0_i32_1 = arith.constant 0 : i32
    return %c0_i32, %c0_i32_0 : i32, i32
  }
  func.func @transform_4(%arg0: i32) -> (i32, i32) {
    %c0_i32 = arith.constant 0 : i32
    %c0_i32_0 = arith.constant 0 : i32
    %c0_i32_1 = arith.constant 0 : i32
    return %c0_i32, %c0_i32_0 : i32, i32
  }
  func.func @transform_5(%arg0: i32) -> (i32, i32) {
    %c0_i32 = arith.constant 0 : i32
    %c0_i32_0 = arith.constant 0 : i32
    %c0_i32_1 = arith.constant 0 : i32
    return %c0_i32, %c0_i32_0 : i32, i32
  }
  func.func @transform_6(%arg0: i32) -> (i32, i32) {
    %c0_i32 = arith.constant 0 : i32
    %c0_i32_0 = arith.constant 0 : i32
    %c0_i32_1 = arith.constant 0 : i32
    return %c0_i32, %c0_i32_0 : i32, i32
  }
  func.func @transform_7(%arg0: i32) -> (i32, i32) {
    %c0_i32 = arith.constant 0 : i32
    %c0_i32_0 = arith.constant 0 : i32
    %c0_i32_1 = arith.constant 0 : i32
    return %c0_i32, %c0_i32_0 : i32, i32
  }
  func.func @transform_8(%arg0: i32) -> (i32, i32) {
    %c0_i32 = arith.constant 0 : i32
    %c0_i32_0 = arith.constant 0 : i32
    %c0_i32_1 = arith.constant 0 : i32
    return %c0_i32, %c0_i32_0 : i32, i32
  }
  func.func @transform_9(%arg0: i32) -> (i32, i32) {
    %c0_i32 = arith.constant 0 : i32
    %c0_i32_0 = arith.constant 0 : i32
    %c0_i32_1 = arith.constant 0 : i32
    return %c0_i32, %c0_i32_0 : i32, i32
  }
  func.func @transform_10(%arg0: i32) -> (i32, i32) {
    %c0_i32 = arith.constant 0 : i32
    %c0_i32_0 = arith.constant 0 : i32
    %c0_i32_1 = arith.constant 0 : i32
    return %c0_i32, %c0_i32_0 : i32, i32
  }
  func.func @transform_11(%arg0: i32) -> (i32, i32) {
    %c0_i32 = arith.constant 0 : i32
    %c0_i32_0 = arith.constant 0 : i32
    %c0_i32_1 = arith.constant 0 : i32
    return %c0_i32, %c0_i32_0 : i32, i32
  }
  func.func @transform_12(%arg0: i32) -> (i32, i32) {
    %c0_i32 = arith.constant 0 : i32
    %c0_i32_0 = arith.constant 0 : i32
    %c0_i32_1 = arith.constant 0 : i32
    return %c0_i32, %c0_i32_0 : i32, i32
  }
  func.func @transform_13(%arg0: i32) -> (i32, i32) {
    %c0_i32 = arith.constant 0 : i32
    %c0_i32_0 = arith.constant 0 : i32
    %c0_i32_1 = arith.constant 0 : i32
    return %c0_i32, %c0_i32_0 : i32, i32
  }
  func.func @transform_14(%arg0: i32) -> (i32, i32) {
    %c0_i32 = arith.constant 0 : i32
    %c0_i32_0 = arith.constant 0 : i32
    %c0_i32_1 = arith.constant 0 : i32
    return %c0_i32, %c0_i32_0 : i32, i32
  }
  func.func @transform_15(%arg0: i32) -> (i32, i32) {
    %c0_i32 = arith.constant 0 : i32
    %c0_i32_0 = arith.constant 0 : i32
    return %arg0, %c0_i32 : i32, i32
  }
}

</mosaic_0001>

<bundles_post_ra>
// kernel: tpu_custom_call.1
= control target key start
LH: loop header
LB: loop body
LE: loop exit
PB: predicated region body
PF: predicated region fallthrough
CT: control target
= control target key end

     0   :  { %20 = vsyncpa [#allocation3], 0  ;;  %s2271_s0 = inlined_call_operand.vmem [shape: bf16[128,8], index: 0, kind: input, shape index: {}]   ;;  %s2272_s1 = inlined_call_operand.vmem [shape: bf16[128,128], index: 1, kind: input, shape index: {}]   ;;  %s2273_s2 = inlined_call_operand.hbm [shape: bf16[8,32], index: 2, kind: input, shape index: {}]   ;;  %s2274_s3 = inlined_call_operand.hbm [shape: bf16[8,32], index: 3, kind: input, shape index: {}]   ;;  %s2275_s4 = inlined_call_operand.vmem [shape: f32[1,32], index: 4, kind: input, shape index: {}]   ;;  %s2276_s5 = inlined_call_operand.vmem [shape: bf16[32,32], index: 5, kind: input, shape index: {}]   ;;  %s2277_s6 = inlined_call_operand.vmem [shape: bf16[32,32], index: 6, kind: input, shape index: {}]   ;;  %s2278_s7 = inlined_call_operand.hbm [shape: f32[1,32], index: 7, kind: input, shape index: {}]   ;;  %s2279_s8 = inlined_call_operand.hbm [shape: bf16[32,32], index: 8, kind: input, shape index: {}]   ;;  %s2280_s9 = inlined_call_operand.vmem [shape: bf16[32,16], index: 9, kind: input, shape index: {}]   ;;  %s2281_s10 = inlined_call_operand.vmem [shape: f32[1,16], index: 10, kind: input, shape index: {}]   ;;  %s2282_s11 = inlined_call_operand.hbm [shape: bf16[32,128], index: 11, kind: input, shape index: {}]   ;;  %s2283_s12 = inlined_call_operand.hbm [shape: bf16[32,128], index: 12, kind: input, shape index: {}]   ;;  %s2284_s13 = inlined_call_operand.hbm [shape: bf16[16,128], index: 13, kind: input, shape index: {}]   ;;  %s2285_s14 = inlined_call_operand.vmem [shape: f32[1,128], index: 14, kind: input, shape index: {}]   ;;  %s2286_s15 = inlined_call_operand.hbm [shape: f32[128,128], index: 15, kind: output, shape index: {}]  }
   0x1   :  { %21 = vsyncpa [#allocation6], 0 }
   0x2   :  { %22 = vsyncpa [#allocation9], 0 }
   0x3   :  { %23 = vsyncpa [#allocation12], 0  ;;  %s45_s19 = sshll.u32 %s2274_s3, 4  ;;  %s46_s19 = int_to_ptr.hbm [resolvable:$true] %s45_s19 }
   0x4   :  { %24 = vsyncpa [#allocation4], 0  ;;  %s1806_s20 = smov [#allocation5]   ;;  %s72_s24 = sshll.u32 %s2279_s8, 4  ;;  %s73_s24 = int_to_ptr.hbm [resolvable:$true] %s72_s24 }
   0x5   :  { %s47_s21 = sshll.u32 %s1806_s20, 4  ;;  %s1807_s25 = smov [#allocation8]   ;;  %s48_s21 = int_to_ptr.vmem [resolvable:$true] %s47_s21 }
   0x6   :  { %50 = dma.hbm_to_vmem [thread:$0]  %s46_s19, 64, %s48_s21, [#allocation6]  }
   0x7   :  { %s74_s26 = sshll.u32 %s1807_s25, 4  ;;  %s1808_s27 = smov 64   ;;  %s75_s26 = int_to_ptr.vmem [resolvable:$true] %s74_s26 }
   0x8   :  { %s1809_s28 = smov 4   ;;  %s102_s30 = sshll.u32 %s2283_s12, 4  ;;  %s103_s30 = int_to_ptr.hbm [resolvable:$true] %s102_s30 }
   0x9   :  { %80 = dma.hbm_to_vmem [thread:$0]  %s73_s24, 256, %s75_s26, [#allocation9], %s1808_s27, %s1808_s27, %s1809_s28  }
   0xa   :  { %s1810_s16 = smov [#allocation11]   ;;  %s34_s18 = sshll.u32 %s2273_s2, 4  ;;  %s35_s18 = int_to_ptr.hbm [resolvable:$true] %s34_s18 }
   0xb   :  { %s104_s17 = sshll.u32 %s1810_s16, 4  ;;  %s1811_s19 = smov [#allocation2]   ;;  %s105_s17 = int_to_ptr.vmem [resolvable:$true] %s104_s17 }
   0xc   :  { %110 = dma.hbm_to_vmem [thread:$0]  %s103_s30, 256, %s105_s17, [#allocation12], %s1808_s27, %s1808_s27, %s1809_s28  }
   0xd   :  { %s36_s20 = sshll.u32 %s1811_s19, 4  ;;  %s62_s23 = sshll.u32 %s2278_s7, 4  ;;  %s37_s20 = int_to_ptr.vmem [resolvable:$true] %s36_s20  ;;  %s63_s23 = int_to_ptr.hbm [resolvable:$true] %s62_s23 }
   0xe   :  { %39 = dma.hbm_to_vmem [thread:$0]  %s35_s18, 64, %s37_s20, [#allocation3]  }
   0xf   :  { %s89_s25 = sshll.u32 %s2282_s11, 4  ;;  %s1812_s26 = smov [#allocation7]   ;;  %s90_s25 = int_to_ptr.hbm [resolvable:$true] %s89_s25 }
  0x10   :  { %s64_s2 = sshll.u32 %s1812_s26, 4  ;;  %s1813_s3 = smov [#allocation10]   ;;  %s65_s2 = int_to_ptr.vmem [resolvable:$true] %s64_s2 }
  0x11   :  { %67 = dma.hbm_to_vmem [thread:$0]  %s63_s23, 16, %s65_s2, [#allocation6]  }
  0x12   :  { %s91_s29 = sshll.u32 %s1813_s3, 4  ;;  %s115_s17 = sshll.u32 %s2284_s13, 4  ;;  %s92_s29 = int_to_ptr.vmem [resolvable:$true] %s91_s29  ;;  %s116_s17 = int_to_ptr.hbm [resolvable:$true] %s115_s17 }
  0x13   :  { %97 = dma.hbm_to_vmem [thread:$0]  %s90_s25, 256, %s92_s29, [#allocation9], %s1808_s27, %s1808_s27, %s1809_s28  }
  0x14   :  { %s1814_s7 = smov [#allocation13]  }
  0x15   :  { %s117_s8 = sshll.u32 %s1814_s7, 4  ;;  %s118_s8 = int_to_ptr.vmem [resolvable:$true] %s117_s8 }
  0x16   :  { %123 = dma.hbm_to_vmem [thread:$0]  %s116_s17, 128, %s118_s8, [#allocation12], %s1808_s27, %s1808_s27, %s1809_s28  }
  0x17   :  { %1796 = dma.done.wait [#allocation3], 64  }
  0x18   :  { %1797 = vsyncadd [#allocation3], 4294967232 }
  0x19   :  { %1798 = dma.done.wait [#allocation6], 80  }
  0x1a   :  { %1799 = vsyncadd [#allocation6], 4294967216 }
  0x1b   :  { %1800 = dma.done.wait [#allocation9], 512  }
  0x1c   :  { %1801 = vsyncadd [#allocation9], 4294966784 }
  0x1d   :  { %1802 = dma.done.wait [#allocation12], 384  }
  0x1e   :  { %1803 = vsyncadd [#allocation12], 4294966912  ;;  %v1935_v0 = vld [vmem:[%s2271_s0 + $0x38] sm:$0xff]  ;;  %v1941_v1 = vld [vmem:[%s2271_s0 + $0x30] sm:$0xff]  ;;  %vm368_vm0 = vcmask 1043456   ;;  %vm343_vm1 = vcmask 64512  }
  0x1f   :  { %284 = vmatpush.bf16.msra.mxu0 %v1935_v0  ;;  %1575 = vmatpush.bf16.msra.mxu3 %v1935_v0  ;;  %v1948_v2 = vld [vmem:[%s2271_s0 + $0x28] sm:$0xff]  ;;  %v1560_v3 = vld [vmem:[%s2271_s0 + $0x20] sm:$0xff]  ;;  %v1559_v4 = vld [vmem:[%s2271_s0 + $0x18] sm:$0xff]  ;;  %vm618_vm2 = vcmask 261120   ;;  %vm1212_vm3 = vcmask 130048   ;;  %s1360_s7 = sshll.u32 %s2286_s15, 4  ;;  %s1361_s7 = int_to_ptr.hbm [resolvable:$true] %s1360_s7 }
  0x20   :  { %v1558_v5 = vld [vmem:[%s2271_s0 + $0x10] sm:$0xff]  ;;  %v1557_v6 = vld [vmem:[%s2271_s0 + $0x8] sm:$0xff]  ;;  %v1556_v7 = vld [vmem:[%s2271_s0] sm:$0xff]  ;;  %s1817_s0 = smov 128   ;;  %s1818_s8 = smov 8  }
  0x21   :  { %v1971_v8 = vld [vmem:[%s2272_s1] sm:$0xff]  ;;  %v1977_v9 = vld [vmem:[%s2272_s1 + $0x8] sm:$0xff]  ;;  %v1983_v10 = vld [vmem:[%s2272_s1 + $0x10] sm:$0xff] }
  0x22   :  { %v1989_v11 = vld [vmem:[%s2272_s1 + $0x18] sm:$0xff]  ;;  %v1995_v12 = vld [vmem:[%s2272_s1 + $0x30] sm:$0xff]  ;;  %v2001_v13 = vld [vmem:[%s2272_s1 + $0x20] sm:$0xff] }
  0x23   :  { %285 = vmatpush.bf16.msra.mxu0 %v1941_v1  ;;  %1576 = vmatpush.bf16.msra.mxu3 %v1941_v1  ;;  %v2006_v14 = vld [vmem:[%s2272_s1 + $0x38] sm:$0xff]  ;;  %v2013_v15 = vld [vmem:[%s2272_s1 + $0x28] sm:$0xff]  ;;  %v342_v16 = vld [vmem:[#allocation5] sm:$0xf] }
  0x24   :  { %v370_v17 = vsel %vm368_vm0, %v342_v16, 0  ;;  %v341_v18 = vld [vmem:[#allocation2] sm:$0xf]  ;;  %v1567_v44 = vld [vmem:[%s2277_s6 + $0x8] sm:$0xff] }
  0x25   :  { %379 = vmatpush.bf16.msra.mxu1 %v370_v17  ;;  %v446_v19 = vsel %vm368_vm0, %v341_v18, 0  ;;  %v1566_v47 = vld [vmem:[%s2277_s6] sm:$0xff] }
  0x26   :  { %455 = vmatpush.bf16.msra.mxu2 %v446_v19  ;;  %v2044_v52 = vld [vmem:[%s2275_s4] ss:$0 sm:$0xff] }
  0x27   :  { %286 = vmatpush.bf16.msra.mxu0 %v1948_v2  ;;  %1577 = vmatpush.bf16.msra.mxu3 %v1948_v2 }
  0x28   :  { %1440 = vmatmul.msk.bf16.vlgmr.msra.gmra.mxu1 %vm343_vm1, %v1556_v7 }
  0x29   :  { %649 = vmatpush.bf16.msrb.mxu1 %v1567_v44 }
  0x2b   :  { %287 = vmatpush.bf16.msra.mxu0 %v1560_v3  ;;  %1578 = vmatpush.bf16.msra.mxu3 %v1560_v3 }
  0x2d   :  { %650 = vmatpush.bf16.msrb.mxu1 %v1566_v47 }
  0x2f   :  { %288 = vmatpush.bf16.msra.mxu0 %v1559_v4  ;;  %1579 = vmatpush.bf16.msra.mxu3 %v1559_v4 }
  0x33   :  { %289 = vmatpush.bf16.msra.mxu0 %v1558_v5  ;;  %1580 = vmatpush.bf16.msra.mxu3 %v1558_v5 }
  0x37   :  { %290 = vmatpush.bf16.msra.mxu0 %v1557_v6  ;;  %1581 = vmatpush.bf16.msra.mxu3 %v1557_v6 }
  0x38   :  { %1441 = vmatmul.msk.bf16.gmra.mxu1 %vm343_vm1, %v1557_v6 }
  0x3b   :  { %291 = vmatpush.bf16.msra.mxu0 %v1556_v7  ;;  %1582 = vmatpush.bf16.msra.mxu3 %v1556_v7 }
  0x3e   :  { %292 = vmatmul.bf16.vlgmr.msra.gmra.mxu0 %v1971_v8  ;;  %322 = vmatmul.bf16.vlgmr.msra.gmra.mxu3 %v1995_v12 }
  0x48   :  { %1442 = vmatmul.msk.bf16.gmra.mxu1 %vm343_vm1, %v1558_v5 }
  0x4e   :  { %297 = vmatmul.bf16.gmra.mxu0 %v1977_v9  ;;  %327 = vmatmul.bf16.gmra.mxu3 %v2006_v14 }
  0x58   :  { %1443 = vmatmul.msk.bf16.gmra.mxu1 %vm343_vm1, %v1559_v4 }
  0x5e   :  { %302 = vmatmul.bf16.gmra.mxu0 %v1983_v10 }
  0x68   :  { %1444 = vmatmul.msk.bf16.gmra.mxu1 %vm343_vm1, %v1560_v3 }
  0x6e   :  { %307 = vmatmul.bf16.gmra.mxu0 %v1989_v11 }
  0x78   :  { %1445 = vmatmul.msk.bf16.gmra.mxu1 %vm343_vm1, %v1948_v2 }
  0x7e   :  { %312 = vmatmul.bf16.gmra.mxu0 %v2001_v13 }
  0x88   :  { %1446 = vmatmul.msk.bf16.gmra.mxu1 %vm343_vm1, %v1941_v1 }
  0x8e   :  { %317 = vmatmul.bf16.gmra.mxu0 %v2013_v15 }
  0x98   :  { %1447 = vmatmul.msk.bf16.gmra.mxu1 %vm343_vm1, %v1935_v0 }
  0xa5   :  { %v381_v42 = vpop.f32.mrf.mxu1 }
  0xad   :  { %v383_v46 = vpop.f32.mrf.mxu1 }
  0xb5   :  { %v386_v48 = vpop.f32.mrf.mxu1 }
  0xbb   :  { %v293_v20 = vpop.f32.mrf.mxu0 }
  0xbd   :  { %v388_v50 = vpop.f32.mrf.mxu1 }
  0xc1   :  { %v323_v37 = vpop.f32.mrf.mxu3 }
  0xc3   :  { %v295_v21 = vpop.f32.mrf.mxu0 }
  0xc4   :  { %v333_v22 = vpack.c.bf16 %v295_v21, %v293_v20 }
  0xc5   :  { %v391_v56 = vpop.f32.mrf.mxu1 }
  0xc6   :  { %1448 = vmatmul.msk.bf16.vlgmr.msra.gmra.mxu2 %vm343_vm1, %v333_v22 }
  0xc9   :  { %v325_v39 = vpop.f32.mrf.mxu3 }
  0xca   :  { %v339_v40 = vpack.c.bf16 %v325_v39, %v323_v37 }
  0xcb   :  { %v298_v23 = vpop.f32.mrf.mxu0 }
  0xcd   :  { %v393_v62 = vpop.f32.mrf.mxu1 }
  0xd1   :  { %v328_v41 = vpop.f32.mrf.mxu3 }
  0xd3   :  { %v300_v24 = vpop.f32.mrf.mxu0 }
  0xd4   :  { %v334_v25 = vpack.c.bf16 %v300_v24, %v298_v23 }
  0xd5   :  { %v396_v6 = vpop.f32.mrf.mxu1 }
  0xd6   :  { %1449 = vmatmul.msk.bf16.gmra.mxu2 %vm343_vm1, %v334_v25 }
  0xd9   :  { %v330_v43 = vpop.f32.mrf.mxu3 }
  0xda   :  { %v340_v45 = vpack.c.bf16 %v330_v43, %v328_v41 }
  0xdb   :  { %v303_v26 = vpop.f32.mrf.mxu0 }
  0xdd   :  { %v398_v19 = vpop.f32.mrf.mxu1 }
  0xe3   :  { %v305_v27 = vpop.f32.mrf.mxu0 }
  0xe4   :  { %v335_v28 = vpack.c.bf16 %v305_v27, %v303_v26 }
  0xe5   :  { %v401_v27 = vpop.f32.mrf.mxu1 }
  0xe6   :  { %1450 = vmatmul.msk.bf16.gmra.mxu2 %vm343_vm1, %v335_v28 }
  0xeb   :  { %v308_v29 = vpop.f32.mrf.mxu0 }
  0xf3   :  { %v310_v30 = vpop.f32.mrf.mxu0 }
  0xf4   :  { %v336_v31 = vpack.c.bf16 %v310_v30, %v308_v29 }
  0xf6   :  { %1451 = vmatmul.msk.bf16.gmra.mxu2 %vm343_vm1, %v336_v31 }
  0xfb   :  { %v313_v32 = vpop.f32.mrf.mxu0 }
 0x103   :  { %v315_v33 = vpop.f32.mrf.mxu0 }
 0x104   :  { %v337_v34 = vpack.c.bf16 %v315_v33, %v313_v32  ;;  %v403_v33 = vpop.f32.mrf.mxu1 }
 0x106   :  { %1452 = vmatmul.msk.bf16.gmra.mxu2 %vm343_vm1, %v337_v34 }
 0x10b   :  { %v318_v35 = vpop.f32.mrf.mxu0 }
 0x10c   :  { %v406_v39 = vpop.f32.mrf.mxu1 }
 0x113   :  { %v320_v36 = vpop.f32.mrf.mxu0 }
 0x114   :  { %v338_v38 = vpack.c.bf16 %v320_v36, %v318_v35  ;;  %v408_v47 = vpop.f32.mrf.mxu1 }
 0x116   :  { %1453 = vmatmul.msk.bf16.gmra.mxu2 %vm343_vm1, %v338_v38 }
 0x126   :  { %1454 = vmatmul.msk.bf16.gmra.mxu2 %vm343_vm1, %v339_v40 }
 0x136   :  { %1455 = vmatmul.msk.bf16.gmra.mxu2 %vm343_vm1, %v340_v45 }
 0x149   :  { %v457_v49 = vpop.f32.mrf.mxu2 }
 0x14a   :  { %v458_v51 = vadd.f32 %v457_v49, %v381_v42 }
 0x14c   :  { %v500_v54 = vadd.f32 %v2044_v52, %v458_v51 }
 0x14e   :  { %v516_v58 = vmax.f32 %v500_v54, 0.0  ;;  %v411_v54 = vpop.f32.mrf.mxu1 }
 0x151   :  { %v459_v53 = vpop.f32.mrf.mxu2 }
 0x152   :  { %v460_v55 = vadd.f32 %v459_v53, %v383_v46 }
 0x154   :  { %v501_v57 = vadd.f32 %v2044_v52, %v460_v55 }
 0x156   :  { %v517_v59 = vmax.f32 %v501_v57, 0.0 }
 0x158   :  { %v2048_v60 = vpack.c.bf16 %v517_v59, %v516_v58 }
 0x159   :  { %v462_v61 = vpop.f32.mrf.mxu2 }
 0x15a   :  { %1464 = vmatmul.msk.bf16.vlgmr.msrb.gmra.mxu1 %vm618_vm2, %v2048_v60  ;;  %v463_v63 = vadd.f32 %v462_v61, %v386_v48  ;;  %v413_v61 = vpop.f32.mrf.mxu1 }
 0x15c   :  { %v502_v1 = vadd.f32 %v2044_v52, %v463_v63 }
 0x15e   :  { %v518_v4 = vmax.f32 %v502_v1, 0.0 }
 0x161   :  { %v464_v0 = vpop.f32.mrf.mxu2 }
 0x162   :  { %v465_v2 = vadd.f32 %v464_v0, %v388_v50 }
 0x164   :  { %v503_v3 = vadd.f32 %v2044_v52, %v465_v2 }
 0x166   :  { %v519_v5 = vmax.f32 %v503_v3, 0.0 }
 0x168   :  { %v2054_v7 = vpack.c.bf16 %v519_v5, %v518_v4  ;;  %v416_v5 = vpop.f32.mrf.mxu1 }
 0x169   :  { %v467_v16 = vpop.f32.mrf.mxu2 }
 0x16a   :  { %1465 = vmatmul.msk.bf16.gmra.mxu1 %vm618_vm2, %v2054_v7  ;;  %v468_v17 = vadd.f32 %v467_v16, %v391_v56 }
 0x16c   :  { %v504_v20 = vadd.f32 %v2044_v52, %v468_v17 }
 0x16e   :  { %v520_v23 = vmax.f32 %v504_v20, 0.0 }
 0x171   :  { %v469_v18 = vpop.f32.mrf.mxu2 }
 0x172   :  { %v470_v21 = vadd.f32 %v469_v18, %v393_v62  ;;  %v418_v18 = vpop.f32.mrf.mxu1 }
 0x174   :  { %v505_v22 = vadd.f32 %v2044_v52, %v470_v21 }
 0x176   :  { %v521_v24 = vmax.f32 %v505_v22, 0.0 }
 0x178   :  { %v2060_v25 = vpack.c.bf16 %v521_v24, %v520_v23 }
 0x179   :  { %v472_v26 = vpop.f32.mrf.mxu2 }
 0x17a   :  { %1466 = vmatmul.msk.bf16.gmra.mxu1 %vm618_vm2, %v2060_v25  ;;  %v473_v28 = vadd.f32 %v472_v26, %v396_v6 }
 0x17c   :  { %v506_v30 = vadd.f32 %v2044_v52, %v473_v28 }
 0x17e   :  { %v522_v34 = vmax.f32 %v506_v30, 0.0 }
 0x181   :  { %v474_v29 = vpop.f32.mrf.mxu2 }
 0x182   :  { %v475_v31 = vadd.f32 %v474_v29, %v398_v19 }
 0x184   :  { %v507_v32 = vadd.f32 %v2044_v52, %v475_v31 }
 0x186   :  { %v523_v35 = vmax.f32 %v507_v32, 0.0 }
 0x188   :  { %v2066_v36 = vpack.c.bf16 %v523_v35, %v522_v34 }
 0x189   :  { %v477_v37 = vpop.f32.mrf.mxu2 }
 0x18a   :  { %1467 = vmatmul.msk.bf16.gmra.mxu1 %vm618_vm2, %v2066_v36  ;;  %v478_v38 = vadd.f32 %v477_v37, %v401_v27  ;;  %v1564_v27 = vld [vmem:[%s2276_s5] sm:$0xff] }
 0x18c   :  { %v508_v41 = vadd.f32 %v2044_v52, %v478_v38 }
 0x18e   :  { %v524_v44 = vmax.f32 %v508_v41, 0.0 }
 0x191   :  { %v479_v40 = vpop.f32.mrf.mxu2 }
 0x192   :  { %v480_v42 = vadd.f32 %v479_v40, %v403_v33 }
 0x194   :  { %v509_v43 = vadd.f32 %v2044_v52, %v480_v42 }
 0x196   :  { %v525_v45 = vmax.f32 %v509_v43, 0.0 }
 0x198   :  { %v2072_v46 = vpack.c.bf16 %v525_v45, %v524_v44 }
 0x199   :  { %v482_v48 = vpop.f32.mrf.mxu2 }
 0x19a   :  { %1468 = vmatmul.msk.bf16.gmra.mxu1 %vm618_vm2, %v2072_v46  ;;  %v483_v49 = vadd.f32 %v482_v48, %v406_v39  ;;  %v2122_v48 = vld [vmem:[#allocation10 + $0x8] sm:$0xff] }
 0x19c   :  { %v510_v51 = vadd.f32 %v2044_v52, %v483_v49  ;;  %v2125_v49 = vld [vmem:[#allocation10] sm:$0xff] }
 0x19e   :  { %v526_v56 = vmax.f32 %v510_v51, 0.0 }
 0x1a1   :  { %v484_v50 = vpop.f32.mrf.mxu2 }
 0x1a2   :  { %v485_v53 = vadd.f32 %v484_v50, %v408_v47 }
 0x1a4   :  { %v511_v55 = vadd.f32 %v2044_v52, %v485_v53 }
 0x1a6   :  { %v527_v57 = vmax.f32 %v511_v55, 0.0 }
 0x1a8   :  { %v2078_v58 = vpack.c.bf16 %v527_v57, %v526_v56  ;;  %v1569_v56 = vld [vmem:[#allocation8 + $0x8] sm:$0xff] }
 0x1a9   :  { %v487_v59 = vpop.f32.mrf.mxu2  ;;  %v2129_v57 = vld [vmem:[#allocation11 + $0x8] sm:$0xff]  ;;  %867 = vmatpush.bf16.msrb.mxu0 %v1569_v56 }
 0x1aa   :  { %1469 = vmatmul.msk.bf16.gmra.mxu1 %vm618_vm2, %v2078_v58  ;;  %v488_v62 = vadd.f32 %v487_v59, %v411_v54 }
 0x1ab   :  { %1100 = vmatpush.bf16.msra.mxu1 %v2129_v57 }
 0x1ac   :  { %v512_v0 = vadd.f32 %v2044_v52, %v488_v62 }
 0x1ae   :  { %v528_v3 = vmax.f32 %v512_v0, 0.0  ;;  %v2132_v0 = vld [vmem:[#allocation11] sm:$0xff] }
 0x1af   :  { %1101 = vmatpush.bf16.msra.mxu1 %v2132_v0 }
 0x1b1   :  { %v489_v63 = vpop.f32.mrf.mxu2 }
 0x1b2   :  { %v490_v1 = vadd.f32 %v489_v63, %v413_v61  ;;  %v1568_v63 = vld [vmem:[#allocation8] sm:$0xff] }
 0x1b3   :  { %868 = vmatpush.bf16.msrb.mxu0 %v1568_v63 }
 0x1b4   :  { %v513_v2 = vadd.f32 %v2044_v52, %v490_v1 }
 0x1b6   :  { %v529_v4 = vmax.f32 %v513_v2, 0.0 }
 0x1b8   :  { %v2084_v6 = vpack.c.bf16 %v529_v4, %v528_v3 }
 0x1b9   :  { %v492_v16 = vpop.f32.mrf.mxu2 }
 0x1ba   :  { %1470 = vmatmul.msk.bf16.gmra.mxu1 %vm618_vm2, %v2084_v6  ;;  %v493_v17 = vadd.f32 %v492_v16, %v416_v5  ;;  %v2138_v5 = vld [vmem:[#allocation7] ss:$0 sm:$0xff] }
 0x1bc   :  { %v514_v20 = vadd.f32 %v2044_v52, %v493_v17 }
 0x1be   :  { %v530_v23 = vmax.f32 %v514_v20, 0.0 }
 0x1c1   :  { %v494_v19 = vpop.f32.mrf.mxu2 }
 0x1c2   :  { %v495_v21 = vadd.f32 %v494_v19, %v418_v18 }
 0x1c4   :  { %v515_v22 = vadd.f32 %v2044_v52, %v495_v21  ;;  %v1565_v52 = vld [vmem:[%s2276_s5 + $0x8] sm:$0xff]  ;;  %s1815_s5 = smov 112  }
 0x1c5   :  { %734 = vmatpush.bf16.msrb.mxu2 %v1565_v52 }
 0x1c6   :  { %v531_v24 = vmax.f32 %v515_v22, 0.0 }
 0x1c8   :  { %v2090_v26 = vpack.c.bf16 %v531_v24, %v530_v23 }
 0x1c9   :  { %735 = vmatpush.bf16.msrb.mxu2 %v1564_v27 }
 0x1ca   :  { %541 = vmatpush.bf16.msrb.mxu3 %v2090_v26  ;;  %1471 = vmatmul.msk.bf16.gmra.mxu1 %vm618_vm2, %v2090_v26 }
 0x1cd   :  { %1161 = vmatpush.bf16.msra.mxu2 %v2122_v48 }
 0x1ce   :  { %542 = vmatpush.bf16.msrb.mxu3 %v2084_v6 }
 0x1d1   :  { %1162 = vmatpush.bf16.msra.mxu2 %v2125_v49 }
 0x1d2   :  { %543 = vmatpush.bf16.msrb.mxu3 %v2078_v58 }
 0x1d6   :  { %544 = vmatpush.bf16.msrb.mxu3 %v2072_v46 }
 0x1d7   :  { %v652_v54 = vpop.f32.mrf.mxu1 }
 0x1da   :  { %545 = vmatpush.bf16.msrb.mxu3 %v2066_v36 }
 0x1de   :  { %546 = vmatpush.bf16.msrb.mxu3 %v2060_v25 }
 0x1df   :  { %v654_v62 = vpop.f32.mrf.mxu1 }
 0x1e2   :  { %547 = vmatpush.bf16.msrb.mxu3 %v2054_v7 }
 0x1e6   :  { %548 = vmatpush.bf16.msrb.mxu3 %v2048_v60 }
 0x1e7   :  { %v657_v1 = vpop.f32.mrf.mxu1 }
 0x1e9   :  { %549 = vmatmul.bf16.vlgmr.msrb.gmra.mxu3 %v1971_v8 }
 0x1ef   :  { %v659_v2 = vpop.f32.mrf.mxu1 }
 0x1f7   :  { %v662_v19 = vpop.f32.mrf.mxu1 }
 0x1f9   :  { %554 = vmatmul.bf16.gmra.mxu3 %v1977_v9 }
 0x209   :  { %559 = vmatmul.bf16.gmra.mxu3 %v1983_v10 }
 0x219   :  { %564 = vmatmul.bf16.gmra.mxu3 %v1989_v11 }
 0x229   :  { %569 = vmatmul.bf16.gmra.mxu3 %v2001_v13 }
 0x239   :  { %574 = vmatmul.bf16.gmra.mxu3 %v2013_v15 }
 0x249   :  { %579 = vmatmul.bf16.gmra.mxu3 %v1995_v12 }
 0x259   :  { %584 = vmatmul.bf16.gmra.mxu3 %v2006_v14 }
 0x26c   :  { %v550_v28 = vpop.f32.mrf.mxu3 }
 0x274   :  { %v552_v29 = vpop.f32.mrf.mxu3 }
 0x275   :  { %v590_v30 = vpack.c.bf16 %v552_v29, %v550_v28 }
 0x277   :  { %1480 = vmatmul.msk.bf16.vlgmr.msrb.gmra.mxu2 %vm618_vm2, %v590_v30 }
 0x27c   :  { %v555_v31 = vpop.f32.mrf.mxu3 }
 0x284   :  { %v557_v32 = vpop.f32.mrf.mxu3 }
 0x285   :  { %v591_v33 = vpack.c.bf16 %v557_v32, %v555_v31 }
 0x287   :  { %1481 = vmatmul.msk.bf16.gmra.mxu2 %vm618_vm2, %v591_v33 }
 0x28c   :  { %v560_v34 = vpop.f32.mrf.mxu3 }
 0x294   :  { %v562_v35 = vpop.f32.mrf.mxu3 }
 0x295   :  { %v592_v37 = vpack.c.bf16 %v562_v35, %v560_v34 }
 0x297   :  { %1482 = vmatmul.msk.bf16.gmra.mxu2 %vm618_vm2, %v592_v37 }
 0x29c   :  { %v565_v38 = vpop.f32.mrf.mxu3 }
 0x2a4   :  { %v567_v39 = vpop.f32.mrf.mxu3 }
 0x2a5   :  { %v593_v40 = vpack.c.bf16 %v567_v39, %v565_v38 }
 0x2a7   :  { %1483 = vmatmul.msk.bf16.gmra.mxu2 %vm618_vm2, %v593_v40 }
 0x2ac   :  { %v570_v41 = vpop.f32.mrf.mxu3 }
 0x2b4   :  { %v572_v42 = vpop.f32.mrf.mxu3 }
 0x2b5   :  { %v594_v43 = vpack.c.bf16 %v572_v42, %v570_v41 }
 0x2b7   :  { %1484 = vmatmul.msk.bf16.gmra.mxu2 %vm618_vm2, %v594_v43 }
 0x2bc   :  { %v575_v44 = vpop.f32.mrf.mxu3 }
 0x2c4   :  { %v577_v45 = vpop.f32.mrf.mxu3 }
 0x2c5   :  { %v595_v47 = vpack.c.bf16 %v577_v45, %v575_v44 }
 0x2c7   :  { %1485 = vmatmul.msk.bf16.gmra.mxu2 %vm618_vm2, %v595_v47 }
 0x2cc   :  { %v580_v50 = vpop.f32.mrf.mxu3 }
 0x2d4   :  { %v582_v51 = vpop.f32.mrf.mxu3 }
 0x2d5   :  { %v596_v53 = vpack.c.bf16 %v582_v51, %v580_v50 }
 0x2d7   :  { %1486 = vmatmul.msk.bf16.gmra.mxu2 %vm618_vm2, %v596_v53 }
 0x2dc   :  { %v585_v55 = vpop.f32.mrf.mxu3 }
 0x2e4   :  { %v587_v59 = vpop.f32.mrf.mxu3 }
 0x2e5   :  { %v597_v61 = vpack.c.bf16 %v587_v59, %v585_v55 }
 0x2e7   :  { %1487 = vmatmul.msk.bf16.gmra.mxu2 %vm618_vm2, %v597_v61 }
 0x2f7   :  { %1528 = vmatmul.msk.bf16.vlgmr.msra.gmra.mxu2 %vm618_vm2, %v2048_v60  ;;  %v664_v60 = vpop.f32.mrf.mxu1 }
 0x2fa   :  { %v737_v3 = vpop.f32.mrf.mxu2 }
 0x2fb   :  { %v738_v4 = vadd.f32 %v737_v3, %v652_v54 }
 0x2fd   :  { %v780_v17 = vadd.f32 %v2138_v5, %v738_v4 }
 0x2ff   :  { %v796_v21 = vmax.f32 %v780_v17, 0.0 }
 0x302   :  { %v739_v16 = vpop.f32.mrf.mxu2 }
 0x303   :  { %v740_v18 = vadd.f32 %v739_v16, %v654_v62 }
 0x305   :  { %v781_v20 = vadd.f32 %v2138_v5, %v740_v18 }
 0x307   :  { %v797_v22 = vmax.f32 %v781_v20, 0.0  ;;  %1529 = vmatmul.msk.bf16.gmra.mxu2 %vm618_vm2, %v2054_v7  ;;  %v667_v7 = vpop.f32.mrf.mxu1 }
 0x309   :  { %v812_v23 = vpack.c.bf16 %v797_v22, %v796_v21 }
 0x30a   :  { %v742_v24 = vpop.f32.mrf.mxu2 }
 0x30b   :  { %1496 = vmatmul.msk.bf16.vlgmr.msrb.gmra.mxu0 %vm618_vm2, %v812_v23  ;;  %1512 = vmatmul.msk.bf16.vlgmr.msra.gmra.mxu1 %vm618_vm2, %v812_v23  ;;  %v743_v52 = vadd.f32 %v742_v24, %v657_v1 }
 0x30d   :  { %v782_v28 = vadd.f32 %v2138_v5, %v743_v52 }
 0x30f   :  { %v798_v31 = vmax.f32 %v782_v28, 0.0  ;;  %v669_v37 = vpop.f32.mrf.mxu1 }
 0x312   :  { %v744_v27 = vpop.f32.mrf.mxu2 }
 0x313   :  { %v745_v29 = vadd.f32 %v744_v27, %v659_v2 }
 0x315   :  { %v783_v30 = vadd.f32 %v2138_v5, %v745_v29 }
 0x317   :  { %v799_v32 = vmax.f32 %v783_v30, 0.0  ;;  %1530 = vmatmul.msk.bf16.gmra.mxu2 %vm618_vm2, %v2060_v25  ;;  %v672_v45 = vpop.f32.mrf.mxu1 }
 0x319   :  { %v813_v33 = vpack.c.bf16 %v799_v32, %v798_v31 }
 0x31a   :  { %v747_v34 = vpop.f32.mrf.mxu2 }
 0x31b   :  { %1497 = vmatmul.msk.bf16.gmra.mxu0 %vm618_vm2, %v813_v33  ;;  %1513 = vmatmul.msk.bf16.gmra.mxu1 %vm618_vm2, %v813_v33  ;;  %v748_v35 = vadd.f32 %v747_v34, %v662_v19 }
 0x31d   :  { %v784_v39 = vadd.f32 %v2138_v5, %v748_v35 }
 0x31f   :  { %v800_v42 = vmax.f32 %v784_v39, 0.0  ;;  %v674_v55 = vpop.f32.mrf.mxu1 }
 0x322   :  { %v749_v38 = vpop.f32.mrf.mxu2 }
 0x323   :  { %v750_v40 = vadd.f32 %v749_v38, %v664_v60 }
 0x325   :  { %v785_v41 = vadd.f32 %v2138_v5, %v750_v40 }
 0x327   :  { %v801_v43 = vmax.f32 %v785_v41, 0.0  ;;  %1531 = vmatmul.msk.bf16.gmra.mxu2 %vm618_vm2, %v2066_v36  ;;  %v677_v63 = vpop.f32.mrf.mxu1 }
 0x329   :  { %v814_v25 = vpack.c.bf16 %v801_v43, %v800_v42 }
 0x32a   :  { %v752_v44 = vpop.f32.mrf.mxu2 }
 0x32b   :  { %1498 = vmatmul.msk.bf16.gmra.mxu0 %vm618_vm2, %v814_v25  ;;  %1514 = vmatmul.msk.bf16.gmra.mxu1 %vm618_vm2, %v814_v25  ;;  %v753_v47 = vadd.f32 %v752_v44, %v667_v7 }
 0x32d   :  { %v786_v51 = vadd.f32 %v2138_v5, %v753_v47 }
 0x32f   :  { %v802_v56 = vmax.f32 %v786_v51, 0.0  ;;  %v679_v18 = vpop.f32.mrf.mxu1 }
 0x332   :  { %v754_v50 = vpop.f32.mrf.mxu2 }
 0x333   :  { %v755_v53 = vadd.f32 %v754_v50, %v669_v37 }
 0x335   :  { %v787_v54 = vadd.f32 %v2138_v5, %v755_v53 }
 0x337   :  { %v803_v59 = vmax.f32 %v787_v54, 0.0  ;;  %1532 = vmatmul.msk.bf16.gmra.mxu2 %vm618_vm2, %v2072_v46  ;;  %v682_v24 = vpop.f32.mrf.mxu1 }
 0x339   :  { %v815_v36 = vpack.c.bf16 %v803_v59, %v802_v56 }
 0x33a   :  { %v757_v61 = vpop.f32.mrf.mxu2 }
 0x33b   :  { %1499 = vmatmul.msk.bf16.gmra.mxu0 %vm618_vm2, %v815_v36  ;;  %1515 = vmatmul.msk.bf16.gmra.mxu1 %vm618_vm2, %v815_v36  ;;  %v758_v62 = vadd.f32 %v757_v61, %v672_v45 }
 0x33d   :  { %v788_v2 = vadd.f32 %v2138_v5, %v758_v62 }
 0x33f   :  { %v804_v16 = vmax.f32 %v788_v2, 0.0  ;;  %v684_v29 = vpop.f32.mrf.mxu1 }
 0x342   :  { %v759_v1 = vpop.f32.mrf.mxu2 }
 0x343   :  { %v760_v3 = vadd.f32 %v759_v1, %v674_v55 }
 0x345   :  { %v789_v4 = vadd.f32 %v2138_v5, %v760_v3 }
 0x347   :  { %v805_v17 = vmax.f32 %v789_v4, 0.0  ;;  %1533 = vmatmul.msk.bf16.gmra.mxu2 %vm618_vm2, %v2078_v58  ;;  %v687_v37 = vpop.f32.mrf.mxu1 }
 0x349   :  { %v816_v46 = vpack.c.bf16 %v805_v17, %v804_v16 }
 0x34a   :  { %v762_v19 = vpop.f32.mrf.mxu2 }
 0x34b   :  { %1500 = vmatmul.msk.bf16.gmra.mxu0 %vm618_vm2, %v816_v46  ;;  %1516 = vmatmul.msk.bf16.gmra.mxu1 %vm618_vm2, %v816_v46  ;;  %v763_v20 = vadd.f32 %v762_v19, %v677_v63 }
 0x34d   :  { %v790_v22 = vadd.f32 %v2138_v5, %v763_v20 }
 0x34f   :  { %v806_v52 = vmax.f32 %v790_v22, 0.0  ;;  %v689_v40 = vpop.f32.mrf.mxu1 }
 0x352   :  { %v764_v21 = vpop.f32.mrf.mxu2 }
 0x353   :  { %v765_v23 = vadd.f32 %v764_v21, %v679_v18 }
 0x355   :  { %v791_v60 = vadd.f32 %v2138_v5, %v765_v23  ;;  %v1574_v23 = vld [vmem:[#allocation13] sm:$0xff] }
 0x356   :  { %1244 = vmatpush.bf16.msra.mxu0 %v1574_v23 }
 0x357   :  { %v807_v27 = vmax.f32 %v791_v60, 0.0  ;;  %1534 = vmatmul.msk.bf16.gmra.mxu2 %vm618_vm2, %v2084_v6 }
 0x359   :  { %v817_v58 = vpack.c.bf16 %v807_v27, %v806_v52 }
 0x35a   :  { %v767_v28 = vpop.f32.mrf.mxu2 }
 0x35b   :  { %1501 = vmatmul.msk.bf16.gmra.mxu0 %vm618_vm2, %v817_v58  ;;  %1517 = vmatmul.msk.bf16.gmra.mxu1 %vm618_vm2, %v817_v58  ;;  %v768_v30 = vadd.f32 %v767_v28, %v682_v24 }
 0x35d   :  { %v792_v32 = vadd.f32 %v2138_v5, %v768_v30 }
 0x35f   :  { %v808_v34 = vmax.f32 %v792_v32, 0.0 }
 0x362   :  { %v769_v31 = vpop.f32.mrf.mxu2 }
 0x363   :  { %v770_v7 = vadd.f32 %v769_v31, %v684_v29 }
 0x365   :  { %v793_v33 = vadd.f32 %v2138_v5, %v770_v7 }
 0x367   :  { %v809_v35 = vmax.f32 %v793_v33, 0.0 }
 0x369   :  { %v818_v38 = vpack.c.bf16 %v809_v35, %v808_v34 }
 0x36a   :  { %v772_v39 = vpop.f32.mrf.mxu2 }
 0x36b   :  { %1502 = vmatmul.msk.bf16.gmra.mxu0 %vm618_vm2, %v818_v38  ;;  %1518 = vmatmul.msk.bf16.gmra.mxu1 %vm618_vm2, %v818_v38  ;;  %v773_v6 = vadd.f32 %v772_v39, %v687_v37 }
 0x36d   :  { %v794_v42 = vadd.f32 %v2138_v5, %v773_v6 }
 0x36f   :  { %v810_v44 = vmax.f32 %v794_v42, 0.0 }
 0x372   :  { %v774_v41 = vpop.f32.mrf.mxu2 }
 0x373   :  { %v775_v43 = vadd.f32 %v774_v41, %v689_v40 }
 0x375   :  { %v795_v25 = vadd.f32 %v2138_v5, %v775_v43 }
 0x377   :  { %v811_v45 = vmax.f32 %v795_v25, 0.0 }
 0x379   :  { %v2182_v47 = vpack.c.bf16 %v811_v45, %v810_v44 }
 0x37b   :  { %1503 = vmatmul.msk.bf16.gmra.mxu0 %vm618_vm2, %v2182_v47 }
 0x388   :  { %v870_v50 = vpop.f32.mrf.mxu0 }
 0x389   :  { %934 = vrot.lane.b32.xlu0 %v870_v50, %s1815_s5 }
 0x390   :  { %v872_v51 = vpop.f32.mrf.mxu0 }
 0x391   :  { %936 = vrot.lane.b32.xlu0 %v872_v51, %s1815_s5  ;;  %v910_v22 = vpack.c.bf16 %v872_v51, %v870_v50 }
 0x398   :  { %v875_v53 = vpop.f32.mrf.mxu0 }
 0x399   :  { %938 = vrot.lane.b32.xlu1 %v875_v53, %s1815_s5 }
 0x3a0   :  { %v877_v54 = vpop.f32.mrf.mxu0 }
 0x3a1   :  { %940 = vrot.lane.b32.xlu1 %v877_v54, %s1815_s5  ;;  %v911_v21 = vpack.c.bf16 %v877_v54, %v875_v53 }
 0x3a8   :  { %v880_v5 = vpop.f32.mrf.mxu0 }
 0x3a9   :  { %942 = vrot.lane.b32.xlu2 %v880_v5, %s1815_s5 }
 0x3b0   :  { %v882_v55 = vpop.f32.mrf.mxu0 }
 0x3b1   :  { %944 = vrot.lane.b32.xlu2 %v882_v55, %s1815_s5  ;;  %v912_v20 = vpack.c.bf16 %v882_v55, %v880_v5 }
 0x3b8   :  { %v885_v56 = vpop.f32.mrf.mxu0 }
 0x3b9   :  { %946 = vrot.lane.b32.xlu0 %v885_v56, %s1815_s5 }
 0x3c0   :  { %v887_v59 = vpop.f32.mrf.mxu0 }
 0x3c1   :  { %948 = vrot.lane.b32.xlu1 %v887_v59, %s1815_s5  ;;  %v913_v19 = vpack.c.bf16 %v887_v59, %v885_v56 }
 0x3c8   :  { %v890_v36 = vpop.f32.mrf.mxu0 }
 0x3c9   :  { %950 = vrot.lane.b32.xlu2 %v890_v36, %s1815_s5 }
 0x3d0   :  { %v892_v61 = vpop.f32.mrf.mxu0 }
 0x3d1   :  { %952 = vrot.lane.b32.xlu0 %v892_v61, %s1815_s5  ;;  %v914_v18 = vpack.c.bf16 %v892_v61, %v890_v36 }
 0x3d8   :  { %v895_v62 = vpop.f32.mrf.mxu0 }
 0x3d9   :  { %954 = vrot.lane.b32.xlu1 %v895_v62, %s1815_s5 }
 0x3e0   :  { %v897_v63 = vpop.f32.mrf.mxu0 }
 0x3e1   :  { %956 = vrot.lane.b32.xlu2 %v897_v63, %s1815_s5  ;;  %v915_v46 = vpack.c.bf16 %v897_v63, %v895_v62 }
 0x3e8   :  { %v900_v1 = vpop.f32.mrf.mxu0 }
 0x3e9   :  { %958 = vrot.lane.b32.xlu0 %v900_v1, %s1815_s5 }
 0x3f0   :  { %v902_v2 = vpop.f32.mrf.mxu0 }
 0x3f1   :  { %960 = vrot.lane.b32.xlu1 %v902_v2, %s1815_s5  ;;  %v916_v17 = vpack.c.bf16 %v902_v2, %v900_v1 }
 0x3f8   :  { %v905_v3 = vpop.f32.mrf.mxu0 }
 0x3f9   :  { %962 = vrot.lane.b32.xlu2 %v905_v3, %s1815_s5 }
 0x400   :  { %v907_v4 = vpop.f32.mrf.mxu0 }
 0x401   :  { %v917_v16 = vpack.c.bf16 %v907_v4, %v905_v3  ;;  %964 = vrot.lane.b32.xlu0 %v907_v4, %s1815_s5 }
 0x403   :  { %982 = vmatpush.bf16.msra.mxu3 %v917_v16  ;;  %v943_v7 = vpop.permute.xlu2 %942 }
 0x407   :  { %983 = vmatpush.bf16.msra.mxu3 %v916_v17 }
 0x40b   :  { %984 = vmatpush.bf16.msra.mxu3 %v915_v46  ;;  %v945_v35 = vpop.permute.xlu2 %944 }
 0x40f   :  { %985 = vmatpush.bf16.msra.mxu3 %v914_v18 }
 0x413   :  { %986 = vmatpush.bf16.msra.mxu3 %v913_v19 }
 0x417   :  { %987 = vmatpush.bf16.msra.mxu3 %v912_v20 }
 0x41b   :  { %988 = vmatpush.bf16.msra.mxu3 %v911_v21 }
 0x41f   :  { %989 = vmatpush.bf16.msra.mxu3 %v910_v22 }
 0x422   :  { %990 = vmatmul.bf16.vlgmr.msra.gmra.mxu3 %v1971_v8  ;;  %v935_v8 = vpop.permute.xlu0 %934 }
 0x423   :  { %1583 = vmatpush.bf16.msrb.mxu3 %v2129_v57  ;;  %v951_v59 = vpop.permute.xlu2 %950 }
 0x427   :  { %1584 = vmatpush.bf16.msrb.mxu3 %v2132_v0  ;;  %v939_v0 = vpop.permute.xlu1 %938 }
 0x42b   :  { %1585 = vmatpush.bf16.msra.mxu3 %v2122_v48 }
 0x42f   :  { %1586 = vmatpush.bf16.msra.mxu3 %v2125_v49  ;;  %v941_v27 = vpop.permute.xlu1 %940 }
 0x432   :  { %995 = vmatmul.bf16.gmra.mxu3 %v1977_v9 }
 0x437   :  { %v949_v45 = vpop.permute.xlu1 %948 }
 0x43b   :  { %v957_v19 = vpop.permute.xlu2 %956 }
 0x442   :  { %1000 = vmatmul.bf16.gmra.mxu3 %v1983_v10  ;;  %v2219_v10 = vld [vmem:[%s2281_s10] ss:$0 sm:$0xff] }
 0x44b   :  { %v955_v46 = vpop.permute.xlu1 %954 }
 0x452   :  { %1005 = vmatmul.bf16.gmra.mxu3 %v1989_v11  ;;  %v937_v11 = vpop.permute.xlu0 %936 }
 0x45a   :  { %v947_v25 = vpop.permute.xlu0 %946 }
 0x462   :  { %1010 = vmatmul.bf16.gmra.mxu3 %v2001_v13  ;;  %v953_v61 = vpop.permute.xlu0 %952 }
 0x472   :  { %1015 = vmatmul.bf16.gmra.mxu3 %v2013_v15 }
 0x482   :  { %1020 = vmatmul.bf16.gmra.mxu3 %v1995_v12 }
 0x492   :  { %1025 = vmatmul.bf16.gmra.mxu3 %v2006_v14 }
 0x4a2   :  { %1519 = vmatmul.msk.bf16.vlgmr.msrb.gmra.mxu3 %vm618_vm2, %v2182_v47 }
 0x4a5   :  { %v991_v48 = vpop.f32.mrf.mxu3 }
 0x4a6   :  { %v992_v9 = vadd.f32 %v991_v48, %v935_v8 }
 0x4a8   :  { %v1034_v15 = vadd.f32 %v2219_v10, %v992_v9 }
 0x4aa   :  { %v1050_v57 = vmax.f32 %v1034_v15, 0.0 }
 0x4ad   :  { %v993_v13 = vpop.f32.mrf.mxu3 }
 0x4ae   :  { %v994_v49 = vadd.f32 %v993_v13, %v937_v11  ;;  %v959_v13 = vpop.permute.xlu0 %958 }
 0x4b0   :  { %v1035_v12 = vadd.f32 %v2219_v10, %v994_v49  ;;  %v961_v49 = vpop.permute.xlu1 %960 }
 0x4b2   :  { %v1051_v14 = vmax.f32 %v1035_v12, 0.0  ;;  %1535 = vmatmul.msk.bf16.vlgmr.msra.gmra.mxu3 %vm618_vm2, %v2090_v26 }
 0x4b4   :  { %v1066_v24 = vpack.c.bf16 %v1051_v14, %v1050_v57 }
 0x4b5   :  { %v996_v60 = vpop.f32.mrf.mxu3 }
 0x4b6   :  { %1540 = vmatmul.msk.bf16.vlgmr.msra.gmra.mxu0 %vm1212_vm3, %v1066_v24  ;;  %v997_v52 = vadd.f32 %v996_v60, %v939_v0 }
 0x4b8   :  { %v1036_v28 = vadd.f32 %v2219_v10, %v997_v52 }
 0x4ba   :  { %v1052_v31 = vmax.f32 %v1036_v28, 0.0  ;;  %v1164_v28 = vpop.f32.mrf.mxu2 }
 0x4bd   :  { %v998_v58 = vpop.f32.mrf.mxu3 }
 0x4be   :  { %v999_v29 = vadd.f32 %v998_v58, %v941_v27  ;;  %v1103_v27 = vpop.f32.mrf.mxu1 }
 0x4c0   :  { %v1037_v30 = vadd.f32 %v2219_v10, %v999_v29  ;;  %v963_v29 = vpop.permute.xlu2 %962 }
 0x4c2   :  { %v1053_v32 = vmax.f32 %v1037_v30, 0.0 }
 0x4c4   :  { %v1067_v33 = vpack.c.bf16 %v1053_v32, %v1052_v31  ;;  %v965_v31 = vpop.permute.xlu0 %964 }
 0x4c5   :  { %v1001_v34 = vpop.f32.mrf.mxu3 }
 0x4c6   :  { %1541 = vmatmul.msk.bf16.gmra.mxu0 %vm1212_vm3, %v1067_v33  ;;  %v1002_v26 = vadd.f32 %v1001_v34, %v943_v7  ;;  %v1105_v34 = vpop.f32.mrf.mxu1 }
 0x4c8   :  { %v1038_v38 = vadd.f32 %v2219_v10, %v1002_v26 }
 0x4ca   :  { %v1054_v40 = vmax.f32 %v1038_v38, 0.0 }
 0x4cd   :  { %v1003_v37 = vpop.f32.mrf.mxu3 }
 0x4ce   :  { %v1004_v39 = vadd.f32 %v1003_v37, %v945_v35  ;;  %v1166_v35 = vpop.f32.mrf.mxu2 }
 0x4d0   :  { %v1039_v6 = vadd.f32 %v2219_v10, %v1004_v39 }
 0x4d2   :  { %v1055_v41 = vmax.f32 %v1039_v6, 0.0  ;;  %v1108_v6 = vpop.f32.mrf.mxu1 }
 0x4d4   :  { %v1068_v42 = vpack.c.bf16 %v1055_v41, %v1054_v40  ;;  %v1165_v41 = vadd.f32 %v1164_v28, %v1103_v27 }
 0x4d5   :  { %v1006_v43 = vpop.f32.mrf.mxu3 }
 0x4d6   :  { %1542 = vmatmul.msk.bf16.gmra.mxu0 %vm1212_vm3, %v1068_v42  ;;  %v1007_v44 = vadd.f32 %v1006_v43, %v947_v25  ;;  %v1169_v40 = vpop.f32.mrf.mxu2  ;;  %v2250_v42 = vld [vmem:[%s2285_s14] ss:$0 sm:$0xff]  ;;  %s1816_s14 = smov [#allocation14]  }
 0x4d7   :  { %s1358_s30 = sshll.u32 %s1816_s14, 4  ;;  %s1359_s30 = int_to_ptr.vmem [resolvable:$true] %s1358_s30 }
 0x4d8   :  { %v1040_v50 = vadd.f32 %v2219_v10, %v1007_v44 }
 0x4da   :  { %v1056_v54 = vmax.f32 %v1040_v50, 0.0  ;;  %v1110_v43 = vpop.f32.mrf.mxu1  ;;  %v1167_v50 = vadd.f32 %v1166_v35, %v1105_v34 }
 0x4dd   :  { %v1008_v47 = vpop.f32.mrf.mxu3 }
 0x4de   :  { %v1009_v51 = vadd.f32 %v1008_v47, %v949_v45  ;;  %v1171_v45 = vpop.f32.mrf.mxu2 }
 0x4e0   :  { %v1041_v53 = vadd.f32 %v2219_v10, %v1009_v51 }
 0x4e2   :  { %v1057_v5 = vmax.f32 %v1041_v53, 0.0 }
 0x4e4   :  { %v1069_v55 = vpack.c.bf16 %v1057_v5, %v1056_v54  ;;  %v1113_v54 = vpop.f32.mrf.mxu1 }
 0x4e5   :  { %v1011_v56 = vpop.f32.mrf.mxu3 }
 0x4e6   :  { %1543 = vmatmul.msk.bf16.gmra.mxu0 %vm1212_vm3, %v1069_v55  ;;  %v1012_v36 = vadd.f32 %v1011_v56, %v951_v59  ;;  %v1174_v55 = vpop.f32.mrf.mxu2  ;;  %v1170_v59 = vadd.f32 %v1169_v40, %v1108_v6 }
 0x4e8   :  { %v1042_v63 = vadd.f32 %v2219_v10, %v1012_v36 }
 0x4ea   :  { %v1058_v3 = vmax.f32 %v1042_v63, 0.0 }
 0x4ec   :  { %v1115_v63 = vpop.f32.mrf.mxu1 }
 0x4ed   :  { %v1013_v62 = vpop.f32.mrf.mxu3 }
 0x4ee   :  { %v1014_v1 = vadd.f32 %v1013_v62, %v953_v61 }
 0x4f0   :  { %v1043_v2 = vadd.f32 %v2219_v10, %v1014_v1 }
 0x4f2   :  { %v1059_v4 = vmax.f32 %v1043_v2, 0.0  ;;  %v1176_v2 = vpop.f32.mrf.mxu2 }
 0x4f4   :  { %v1070_v16 = vpack.c.bf16 %v1059_v4, %v1058_v3  ;;  %v1172_v3 = vadd.f32 %v1171_v45, %v1110_v43 }
 0x4f5   :  { %v1016_v17 = vpop.f32.mrf.mxu3 }
 0x4f6   :  { %1544 = vmatmul.msk.bf16.gmra.mxu0 %vm1212_vm3, %v1070_v16  ;;  %v1017_v18 = vadd.f32 %v1016_v17, %v955_v46 }
 0x4f8   :  { %v1044_v21 = vadd.f32 %v2219_v10, %v1017_v18  ;;  %v1118_v18 = vpop.f32.mrf.mxu1 }
 0x4fa   :  { %v1060_v8 = vmax.f32 %v1044_v21, 0.0 }
 0x4fd   :  { %v1018_v20 = vpop.f32.mrf.mxu3 }
 0x4fe   :  { %v1019_v22 = vadd.f32 %v1018_v20, %v957_v19  ;;  %v1175_v19 = vadd.f32 %v1174_v55, %v1113_v54  ;;  %v1179_v20 = vpop.f32.mrf.mxu2 }
 0x500   :  { %v1045_v23 = vadd.f32 %v2219_v10, %v1019_v22 }
 0x502   :  { %v1061_v48 = vmax.f32 %v1045_v23, 0.0 }
 0x504   :  { %v1071_v9 = vpack.c.bf16 %v1061_v48, %v1060_v8  ;;  %v1177_v48 = vadd.f32 %v1176_v2, %v1115_v63 }
 0x505   :  { %v1021_v11 = vpop.f32.mrf.mxu3 }
 0x506   :  { %1545 = vmatmul.msk.bf16.gmra.mxu0 %vm1212_vm3, %v1071_v9  ;;  %v1022_v15 = vadd.f32 %v1021_v11, %v959_v13  ;;  %v1120_v9 = vpop.f32.mrf.mxu1 }
 0x508   :  { %v1046_v57 = vadd.f32 %v2219_v10, %v1022_v15  ;;  %v1181_v15 = vpop.f32.mrf.mxu2 }
 0x50a   :  { %v1062_v24 = vmax.f32 %v1046_v57, 0.0  ;;  %v1180_v57 = vadd.f32 %v1179_v20, %v1118_v18 }
 0x50d   :  { %v1023_v12 = vpop.f32.mrf.mxu3 }
 0x50e   :  { %v1024_v14 = vadd.f32 %v1023_v12, %v961_v49 }
 0x510   :  { %v1047_v0 = vadd.f32 %v2219_v10, %v1024_v14 }
 0x512   :  { %v1063_v60 = vmax.f32 %v1047_v0, 0.0 }
 0x514   :  { %v1072_v52 = vpack.c.bf16 %v1063_v60, %v1062_v24  ;;  %v1123_v24 = vpop.f32.mrf.mxu1 }
 0x515   :  { %v1026_v58 = vpop.f32.mrf.mxu3 }
 0x516   :  { %1546 = vmatmul.msk.bf16.gmra.mxu0 %vm1212_vm3, %v1072_v52  ;;  %v1027_v30 = vadd.f32 %v1026_v58, %v963_v29  ;;  %v1184_v52 = vpop.f32.mrf.mxu2  ;;  %v1182_v58 = vadd.f32 %v1181_v15, %v1120_v9 }
 0x518   :  { %v1048_v7 = vadd.f32 %v2219_v10, %v1027_v30 }
 0x51a   :  { %v1064_v37 = vmax.f32 %v1048_v7, 0.0 }
 0x51d   :  { %v1028_v32 = vpop.f32.mrf.mxu3 }
 0x51e   :  { %v1029_v33 = vadd.f32 %v1028_v32, %v965_v31  ;;  %v1125_v31 = vpop.f32.mrf.mxu1  ;;  %v1186_v7 = vpop.f32.mrf.mxu2 }
 0x520   :  { %v1049_v26 = vadd.f32 %v2219_v10, %v1029_v33  ;;  %v1185_v33 = vadd.f32 %v1184_v52, %v1123_v24 }
 0x522   :  { %v1065_v38 = vmax.f32 %v1049_v26, 0.0 }
 0x524   :  { %v1073_v39 = vpack.c.bf16 %v1065_v38, %v1064_v37 }
 0x525   :  { %v1138_v54 = vpop.f32.mrf.mxu3 }
 0x526   :  { %1547 = vmatmul.msk.bf16.gmra.mxu0 %vm1212_vm3, %v1073_v39  ;;  %v1128_v38 = vpop.f32.mrf.mxu1  ;;  %v1187_v39 = vadd.f32 %v1186_v7, %v1125_v31  ;;  %v1189_v6 = vpop.f32.mrf.mxu2 }
 0x52e   :  { %v1130_v45 = vpop.f32.mrf.mxu1 }
 0x533   :  { %v1246_v25 = vpop.f32.mrf.mxu0 }
 0x534   :  { %v1286_v44 = vadd.f32 %v1246_v25, %v1165_v41 }
 0x536   :  { %v1306_v10 = vadd.f32 %v2250_v42, %v1286_v44  ;;  %v1190_v44 = vadd.f32 %v1189_v6, %v1128_v38 }
 0x538   :  { %v1322_v47 = vmax.f32 %v1306_v10, 0.0 }
 0x53a   :  { %1338 = vst [vmem:[#allocation14] sm:$0xff] %v1322_v47 }
 0x53b   :  { %v1248_v51 = vpop.f32.mrf.mxu0 }
 0x53c   :  { %v1287_v53 = vadd.f32 %v1248_v51, %v1167_v50  ;;  %v1191_v50 = vpop.f32.mrf.mxu2 }
 0x53e   :  { %v1307_v5 = vadd.f32 %v2250_v42, %v1287_v53 }
 0x540   :  { %v1323_v56 = vmax.f32 %v1307_v5, 0.0  ;;  %v1192_v5 = vadd.f32 %v1191_v50, %v1130_v45 }
 0x542   :  { %1339 = vst [vmem:[#allocation14 + $0x8] sm:$0xff] %v1323_v56 }
 0x543   :  { %v1251_v36 = vpop.f32.mrf.mxu0 }
 0x544   :  { %v1288_v61 = vadd.f32 %v1251_v36, %v1170_v59  ;;  %v1133_v59 = vpop.f32.mrf.mxu1 }
 0x546   :  { %v1308_v62 = vadd.f32 %v2250_v42, %v1288_v61  ;;  %v1194_v61 = vpop.f32.mrf.mxu2 }
 0x547   :  { %v1195_v63 = vadd.f32 %v1194_v61, %v1133_v59 }
 0x548   :  { %v1324_v1 = vmax.f32 %v1308_v62, 0.0 }
 0x54a   :  { %1340 = vst [vmem:[#allocation14 + $0x10] sm:$0xff] %v1324_v1  ;;  %v1140_v1 = vpop.f32.mrf.mxu3 }
 0x54b   :  { %v1253_v4 = vpop.f32.mrf.mxu0 }
 0x54c   :  { %v1289_v16 = vadd.f32 %v1253_v4, %v1172_v3 }
 0x54e   :  { %v1309_v17 = vadd.f32 %v2250_v42, %v1289_v16  ;;  %v1135_v16 = vpop.f32.mrf.mxu1 }
 0x550   :  { %v1325_v46 = vmax.f32 %v1309_v17, 0.0 }
 0x552   :  { %1341 = vst [vmem:[#allocation14 + $0x18] sm:$0xff] %v1325_v46  ;;  %v1196_v46 = vpop.f32.mrf.mxu2 }
 0x553   :  { %v1256_v21 = vpop.f32.mrf.mxu0  ;;  %v1197_v18 = vadd.f32 %v1196_v46, %v1135_v16 }
 0x554   :  { %v1290_v22 = vadd.f32 %v1256_v21, %v1175_v19  ;;  %v1199_v21 = vpop.f32.mrf.mxu3 }
 0x556   :  { %v1310_v23 = vadd.f32 %v2250_v42, %v1290_v22 }
 0x558   :  { %v1326_v8 = vmax.f32 %v1310_v23, 0.0 }
 0x55a   :  { %1342 = vst [vmem:[#allocation14 + $0x20] sm:$0xff] %v1326_v8  ;;  %v1200_v8 = vadd.f32 %v1199_v21, %v1138_v54 }
 0x55b   :  { %v1258_v11 = vpop.f32.mrf.mxu0 }
 0x55c   :  { %v1291_v13 = vadd.f32 %v1258_v11, %v1177_v48 }
 0x55e   :  { %v1311_v49 = vadd.f32 %v2250_v42, %v1291_v13  ;;  %v1201_v13 = vpop.f32.mrf.mxu3 }
 0x560   :  { %v1327_v12 = vmax.f32 %v1311_v49, 0.0  ;;  %v1202_v49 = vadd.f32 %v1201_v13, %v1140_v1 }
 0x562   :  { %1343 = vst [vmem:[#allocation14 + $0x28] sm:$0xff] %v1327_v12 }
 0x563   :  { %v1261_v14 = vpop.f32.mrf.mxu0 }
 0x564   :  { %v1292_v0 = vadd.f32 %v1261_v14, %v1180_v57 }
 0x566   :  { %v1312_v60 = vadd.f32 %v2250_v42, %v1292_v0 }
 0x568   :  { %v1328_v27 = vmax.f32 %v1312_v60, 0.0 }
 0x56a   :  { %1344 = vst [vmem:[#allocation14 + $0x30] sm:$0xff] %v1328_v27 }
 0x56b   :  { %v1263_v28 = vpop.f32.mrf.mxu0 }
 0x56c   :  { %v1293_v29 = vadd.f32 %v1263_v28, %v1182_v58 }
 0x56e   :  { %v1313_v30 = vadd.f32 %v2250_v42, %v1293_v29 }
 0x570   :  { %v1329_v32 = vmax.f32 %v1313_v30, 0.0 }
 0x572   :  { %1345 = vst [vmem:[#allocation14 + $0x38] sm:$0xff] %v1329_v32 }
 0x573   :  { %v1266_v34 = vpop.f32.mrf.mxu0 }
 0x574   :  { %v1294_v26 = vadd.f32 %v1266_v34, %v1185_v33 }
 0x576   :  { %v1314_v35 = vadd.f32 %v2250_v42, %v1294_v26 }
 0x578   :  { %v1330_v37 = vmax.f32 %v1314_v35, 0.0 }
 0x57a   :  { %1346 = vst [vmem:[#allocation14 + $0x40] sm:$0xff] %v1330_v37 }
 0x57b   :  { %v1268_v40 = vpop.f32.mrf.mxu0 }
 0x57c   :  { %v1295_v41 = vadd.f32 %v1268_v40, %v1187_v39 }
 0x57e   :  { %v1315_v43 = vadd.f32 %v2250_v42, %v1295_v41 }
 0x580   :  { %v1331_v25 = vmax.f32 %v1315_v43, 0.0 }
 0x582   :  { %1347 = vst [vmem:[#allocation14 + $0x48] sm:$0xff] %v1331_v25 }
 0x583   :  { %v1271_v10 = vpop.f32.mrf.mxu0 }
 0x584   :  { %v1296_v47 = vadd.f32 %v1271_v10, %v1190_v44 }
 0x586   :  { %v1316_v51 = vadd.f32 %v2250_v42, %v1296_v47 }
 0x588   :  { %v1332_v53 = vmax.f32 %v1316_v51, 0.0 }
 0x58a   :  { %1348 = vst [vmem:[#allocation14 + $0x50] sm:$0xff] %v1332_v53 }
 0x58b   :  { %v1273_v55 = vpop.f32.mrf.mxu0 }
 0x58c   :  { %v1297_v56 = vadd.f32 %v1273_v55, %v1192_v5 }
 0x58e   :  { %v1317_v36 = vadd.f32 %v2250_v42, %v1297_v56 }
 0x590   :  { %v1333_v62 = vmax.f32 %v1317_v36, 0.0 }
 0x592   :  { %1349 = vst [vmem:[#allocation14 + $0x58] sm:$0xff] %v1333_v62 }
 0x593   :  { %v1276_v2 = vpop.f32.mrf.mxu0 }
 0x594   :  { %v1298_v3 = vadd.f32 %v1276_v2, %v1195_v63 }
 0x596   :  { %v1318_v4 = vadd.f32 %v2250_v42, %v1298_v3 }
 0x598   :  { %v1334_v17 = vmax.f32 %v1318_v4, 0.0 }
 0x59a   :  { %1350 = vst [vmem:[#allocation14 + $0x60] sm:$0xff] %v1334_v17 }
 0x59b   :  { %v1278_v19 = vpop.f32.mrf.mxu0 }
 0x59c   :  { %v1299_v20 = vadd.f32 %v1278_v19, %v1197_v18 }
 0x59e   :  { %v1319_v22 = vadd.f32 %v2250_v42, %v1299_v20 }
 0x5a0   :  { %v1335_v23 = vmax.f32 %v1319_v22, 0.0 }
 0x5a2   :  { %1351 = vst [vmem:[#allocation14 + $0x68] sm:$0xff] %v1335_v23 }
 0x5a3   :  { %v1281_v48 = vpop.f32.mrf.mxu0 }
 0x5a4   :  { %v1300_v9 = vadd.f32 %v1281_v48, %v1200_v8 }
 0x5a6   :  { %v1320_v11 = vadd.f32 %v2250_v42, %v1300_v9 }
 0x5a8   :  { %v1336_v15 = vmax.f32 %v1320_v11, 0.0 }
 0x5aa   :  { %1352 = vst [vmem:[#allocation14 + $0x70] sm:$0xff] %v1336_v15 }
 0x5ab   :  { %v1283_v12 = vpop.f32.mrf.mxu0 }
 0x5ac   :  { %v1301_v57 = vadd.f32 %v1283_v12, %v1202_v49 }
 0x5ae   :  { %v1321_v14 = vadd.f32 %v2250_v42, %v1301_v57 }
 0x5b0   :  { %v1337_v0 = vmax.f32 %v1321_v14, 0.0 }
 0x5b2   :  { %1353 = vst [vmem:[#allocation14 + $0x78] sm:$0xff] %v1337_v0 }
 0x5b3   :  { %1366 = dma.vmem_to_hbm [thread:$0]  %s1359_s30, 2048, %s1361_s7, [#allocation4], %s1817_s0, %s1817_s0, %s1818_s8  }
 0x5b4   :  { %1804 = dma.done.wait [#allocation4], 2048  }
 0x5b5   :  { %1805 = vsyncadd [#allocation4], 4294965248 }
 0x5b6   :  { %1371 = vsyncpa [#allocation3], 1 }
 0x5b7   :  { %1372 = vsyncpa [#allocation6], 1 }
 0x5b8   :  { %1373 = vsyncpa [#allocation9], 1 }
 0x5b9   :  { %1374 = vsyncpa [#allocation12], 1 }
 0x5ba   :  { %1375 = vsyncpa [#allocation4], 1 }

</bundles_post_ra>
